<compile_context>
chip_gen: v7x
topology: tpu7x:2x2x1
jax: 0.10.0
libtpu: 0.0.40
codegen_flags: <defaults>
</compile_context>

<pallas_src>
import math
import functools

import jax
import jax.numpy as jnp
from jax import lax
from jax.experimental import pallas as pl
from jax.experimental.pallas import tpu as pltpu

_LN_EPS = 1e-12


def _gelu_tanh(x):
    c = math.sqrt(2.0 / math.pi)
    return 0.5 * x * (1.0 + jnp.tanh(c * (x + 0.044715 * x * x * x)))


@functools.lru_cache(maxsize=1)
def _vmem_limit_bytes():
    """Per-generation VMEM cap: ~100 MiB on 128 MiB parts (v5e/v6e), ~48 MiB on v7x."""
    try:
        cap = getattr(pltpu.get_tpu_info(), "vmem_capacity_bytes", None)
    except Exception:
        cap = None
    if not cap:
        return 48 * 1024 * 1024
    if cap >= 128 * 1024 * 1024:
        return 100 * 1024 * 1024
    return min(48 * 1024 * 1024, (int(cap) * 3) // 4)


def _pick_tile(total, target, granule):
    """Largest divisor of `total` that is a multiple of `granule` and <= target;
    falls back to the full dimension (block == array dim is always legal)."""
    if total <= target:
        return total
    t = (min(target, total) // granule) * granule
    while t >= granule:
        if total % t == 0:
            return t
        t -= granule
    return total


# --------------------------------------------------------------------------
# Kernel 1: fused BertSelfAttention + BertSelfOutput  (one batch element)
# --------------------------------------------------------------------------
def _attn_selfout_kernel(hid_ref, wq_ref, wk_ref, wv_ref, wao_ref,
                         bq_ref, bk_ref, bv_ref, bao_ref, g_ref, beta_ref,
                         mask_ref, out_ref, *, num_heads, head_dim, eps):
    # hid_ref : (1, S, H)   w*_ref : (H, H)   b*/g/beta : (1, H)
    # mask_ref: (1, 1, S)   out_ref: (1, S, H)
    x = hid_ref[0]                                               # [S, H]
    S = x.shape[0]
    H = num_heads * head_dim

    def proj(w_ref, b_ref):
        # Full-width MXU matmul (f32 accumulate), then split/swap into heads.
        y = jnp.dot(x, w_ref[...], preferred_element_type=jnp.float32) + b_ref[...]
        y = y.astype(x.dtype)                                    # matmul operand dtype
        return jnp.swapaxes(y.reshape(S, num_heads, head_dim), 0, 1)   # [nh, S, D]

    # 1/sqrt(D) is already folded into wq/bq by prepare_layer_params.
    q = proj(wq_ref, bq_ref)
    k = proj(wk_ref, bk_ref)
    v = proj(wv_ref, bv_ref)

    # Head-batched scores: [nh, Sq, Sk]
    s = lax.dot_general(q, k, (((2,), (2,)), ((0,), (0,))),
                        preferred_element_type=jnp.float32)
    s = s + mask_ref[...]                                        # (1,1,S) broadcast

    # Softmax in f32 (exact reciprocal: approx vrcp was outside test tolerance).
    m = jnp.max(s, axis=-1, keepdims=True)
    e = jnp.exp(s - m)
    denom = jnp.sum(e, axis=-1, keepdims=True)
    p = e * (1.0 / denom)
    # dropout(attention_probs) is identity in eval mode.

    # Head-batched probs @ V : [nh, S, D]
    ctx = lax.dot_general(p.astype(v.dtype), v, (((2,), (1,)), ((0,), (0,))),
                          preferred_element_type=jnp.float32)
    ctx = jnp.swapaxes(ctx, 0, 1).reshape(S, H)                  # merge heads, [S, H]

    # BertSelfOutput: dense + residual + LayerNorm (all f32 math).
    y = jnp.dot(ctx.astype(wao_ref.dtype), wao_ref[...],
                preferred_element_type=jnp.float32) + bao_ref[...]
    y = y + x.astype(jnp.float32)                                # residual (layer input)
    mu = jnp.mean(y, axis=-1, keepdims=True)
    d = y - mu
    var = jnp.mean(d * d, axis=-1, keepdims=True)
    z = d * lax.rsqrt(var + eps)
    out_ref[0] = (z * g_ref[...] + beta_ref[...]).astype(out_ref.dtype)


def bert_attention_block(hidden, attention_mask, wq, bq, wk, bk, wv, bv,
                         w_ao, b_ao, g_ao, beta_ao, num_heads, *,
                         compute_dtype=jnp.bfloat16, out_dtype=None,
                         eps=_LN_EPS):
    """hidden: [B,S,H]; attention_mask: [B,S] additive; wq/bq pre-scaled by 1/sqrt(D).
    Returns LayerNorm(ctx @ W_ao + b_ao + hidden)  (BertAttention output)."""
    B, S, H = hidden.shape
    D = H // num_heads
    out_dtype = compute_dtype if out_dtype is None else out_dtype

    hid = hidden.astype(compute_dtype)
    mask3 = attention_mask.reshape(B, 1, S).astype(jnp.float32)
    wq_, wk_, wv_, wao_ = (w.astype(compute_dtype) for w in (wq, wk, wv, w_ao))
    bq_, bk_, bv_, bao_ = (b.reshape(1, H).astype(jnp.float32)
                           for b in (bq, bk, bv, b_ao))
    g_ = g_ao.reshape(1, H).astype(jnp.float32)
    beta_ = beta_ao.reshape(1, H).astype(jnp.float32)

    kernel = functools.partial(_attn_selfout_kernel,
                               num_heads=num_heads, head_dim=D, eps=eps)

    ci = jnp.dtype(compute_dtype).itemsize
    co = jnp.dtype(out_dtype).itemsize
    cost = pl.CostEstimate(
        flops=int(8 * B * S * H * H + 4 * B * S * S * H),
        transcendentals=int(B * num_heads * S * S),
        bytes_accessed=int(B * S * H * (ci + co) + 4 * H * H * ci
                           + 6 * H * 4 + B * S * 4))

    # TODO(synk): add a query-tile grid axis (flash-style) for long sequences.
    return pl.pallas_call(
        kernel,
        out_shape=jax.ShapeDtypeStruct((B, S, H), out_dtype),
        grid=(B,),
        in_specs=[
            pl.BlockSpec((1, S, H), lambda b: (b, 0, 0)),        # hidden (read once)
            pl.BlockSpec((H, H), lambda b: (0, 0)),              # wq (scaled), resident
            pl.BlockSpec((H, H), lambda b: (0, 0)),              # wk
            pl.BlockSpec((H, H), lambda b: (0, 0)),              # wv
            pl.BlockSpec((H, H), lambda b: (0, 0)),              # w_ao
            pl.BlockSpec((1, H), lambda b: (0, 0)),              # bq (scaled)
            pl.BlockSpec((1, H), lambda b: (0, 0)),              # bk
            pl.BlockSpec((1, H), lambda b: (0, 0)),              # bv
            pl.BlockSpec((1, H), lambda b: (0, 0)),              # b_ao
            pl.BlockSpec((1, H), lambda b: (0, 0)),              # gamma
            pl.BlockSpec((1, H), lambda b: (0, 0)),              # beta
            pl.BlockSpec((1, 1, S), lambda b: (b, 0, 0)),        # additive mask
        ],
        out_specs=pl.BlockSpec((1, S, H), lambda b: (b, 0, 0)),
        compiler_params=pltpu.CompilerParams(
            dimension_semantics=("parallel",),
            vmem_limit_bytes=_vmem_limit_bytes()),
        cost_estimate=cost,
    )(hid, wq_, wk_, wv_, wao_, bq_, bk_, bv_, bao_, g_, beta_, mask3)


# --------------------------------------------------------------------------
# Kernel 2: fused BertIntermediate + BertOutput, tiled over (S, I)
# --------------------------------------------------------------------------
def _ffn_kernel(x_ref, wi_ref, bi_ref, wo_ref, bo_ref, g_ref, beta_ref,
                out_ref, acc_ref, *, eps):
    it = pl.program_id(2)                                        # I-tile (reduction)

    @pl.when(it == 0)
    def _init():
        acc_ref[...] = jnp.zeros_like(acc_ref)

    x = x_ref[0]                                                 # [tS, H]
    h = jnp.dot(x, wi_ref[...], preferred_element_type=jnp.float32) + bi_ref[...]
    h = _gelu_tanh(h)                                            # f32 [tS, tI]
    acc_ref[...] += jnp.dot(h.astype(wo_ref.dtype), wo_ref[...],
                            preferred_element_type=jnp.float32)

    @pl.when(it == pl.num_programs(2) - 1)
    def _finalize():
        y = acc_ref[...] + bo_ref[...] + x.astype(jnp.float32)   # residual
        mu = jnp.mean(y, axis=-1, keepdims=True)
        d = y - mu
        var = jnp.mean(d * d, axis=-1, keepdims=True)
        z = d * lax.rsqrt(var + eps)
        out_ref[0] = (z * g_ref[...] + beta_ref[...]).astype(out_ref.dtype)


def bert_ffn(attn_out, wi, bi, wo, bo, gamma, beta, *, eps=_LN_EPS,
             compute_dtype=jnp.bfloat16, out_dtype=jnp.float32):
    B, S, H = attn_out.shape
    I = wi.shape[1]
    tS = _pick_tile(S, 256, 16)        # second-minor granule (covers bf16)
    tI = _pick_tile(I, 1024, 256)      # lane-dense I tiles, bounds VMEM on v7x
    nS, nI = S // tS, I // tI

    kernel = functools.partial(_ffn_kernel, eps=eps)

    ci = jnp.dtype(compute_dtype).itemsize
    co = jnp.dtype(out_dtype).itemsize
    cost = pl.CostEstimate(
        flops=int(4 * B * S * H * I),
        transcendentals=int(B * S * I),
        bytes_accessed=int(B * S * H * (ci + co) + 2 * H * I * ci
                           + (I + 3 * H) * 4))

    return pl.pallas_call(
        kernel,
        out_shape=jax.ShapeDtypeStruct((B, S, H), out_dtype),
        grid=(B, nS, nI),                                        # reduction axis last
        in_specs=[
            pl.BlockSpec((1, tS, H), lambda b, s, i: (b, s, 0)),  # a (resident over i)
            pl.BlockSpec((H, tI), lambda b, s, i: (0, i)),        # Wi tile
            pl.BlockSpec((1, tI), lambda b, s, i: (0, i)),        # bi tile
            pl.BlockSpec((tI, H), lambda b, s, i: (i, 0)),        # Wo tile
            pl.BlockSpec((1, H), lambda b, s, i: (0, 0)),         # bo
            pl.BlockSpec((1, H), lambda b, s, i: (0, 0)),         # gamma
            pl.BlockSpec((1, H), lambda b, s, i: (0, 0)),         # beta
        ],
        out_specs=pl.BlockSpec((1, tS, H), lambda b, s, i: (b, s, 0)),
        scratch_shapes=[pltpu.VMEM((tS, H), jnp.float32)],        # f32 accumulator
        compiler_params=pltpu.CompilerParams(
            dimension_semantics=("parallel", "parallel", "arbitrary"),
            vmem_limit_bytes=_vmem_limit_bytes()),
        cost_estimate=cost,
    )(attn_out.astype(compute_dtype), wi.astype(compute_dtype),
      bi.reshape(1, I).astype(jnp.float32), wo.astype(compute_dtype),
      bo.reshape(1, H).astype(jnp.float32),
      gamma.reshape(1, H).astype(jnp.float32),
      beta.reshape(1, H).astype(jnp.float32))


# --------------------------------------------------------------------------
# Layer / encoder wrappers
# --------------------------------------------------------------------------
def prepare_layer_params(p, num_heads):
    """One-time (hoisted) parameter prep: fold 1/sqrt(D) into Wq / bq."""
    H = p["wq"].shape[0]
    scale = 1.0 / math.sqrt(H // num_heads)
    q = dict(p)
    q["wq"] = p["wq"] * scale
    q["bq"] = p["bq"] * scale
    return q


def bert_layer(hidden, attention_mask, p, num_heads, *,
               compute_dtype=jnp.bfloat16, out_dtype=jnp.float32):
    attn_out = bert_attention_block(
        hidden, attention_mask,
        p["wq"], p["bq"], p["wk"], p["bk"], p["wv"], p["bv"],
        p["w_ao"], p["b_ao"], p["g_ao"], p["beta_ao"], num_heads,
        compute_dtype=compute_dtype)
    return bert_ffn(attn_out, p["wi"], p["bi"], p["w_o"], p["b_o"],
                    p["g_o"], p["beta_o"],
                    compute_dtype=compute_dtype, out_dtype=out_dtype)


def bert_encoder(hidden, attention_mask, prepared_params, num_heads, *,
                 output_all_encoded_layers=True, compute_dtype=jnp.bfloat16):
    all_layers = []
    h = hidden
    n = len(prepared_params)
    for idx, p in enumerate(prepared_params):
        out_dtype = jnp.float32 if idx == n - 1 else compute_dtype
        h = bert_layer(h, attention_mask, p, num_heads,
                       compute_dtype=compute_dtype, out_dtype=out_dtype)
        if output_all_encoded_layers:
            all_layers.append(h)
    if not output_all_encoded_layers:
        all_layers.append(h)
    return all_layers


# --------------------------------------------------------------------------
# Pure-JAX reference
# --------------------------------------------------------------------------
def _layernorm_ref(x, g, b, eps=_LN_EPS):
    mu = x.mean(-1, keepdims=True)
    var = ((x - mu) ** 2).mean(-1, keepdims=True)
    return (x - mu) * lax.rsqrt(var + eps) * g + b


def _reference_layer(h, mask, p, num_heads):
    B, S, H = h.shape
    D = H // num_heads

    def proj(w, b):
        y = h @ w + b
        return y.reshape(B, S, num_heads, D).transpose(0, 2, 1, 3)

    q, k, v = proj(p["wq"], p["bq"]), proj(p["wk"], p["bk"]), proj(p["wv"], p["bv"])
    scores = jnp.einsum("bhqd,bhkd->bhqk", q, k) / math.sqrt(D)
    scores = scores + mask[:, None, None, :]
    probs = jax.nn.softmax(scores, axis=-1)
    ctx = jnp.einsum("bhqk,bhkd->bhqd", probs, v)
    ctx = ctx.transpose(0, 2, 1, 3).reshape(B, S, H)
    attn_out = _layernorm_ref(ctx @ p["w_ao"] + p["b_ao"] + h,
                              p["g_ao"], p["beta_ao"])
    inter = _gelu_tanh(attn_out @ p["wi"] + p["bi"])
    return _layernorm_ref(inter @ p["w_o"] + p["b_o"] + attn_out,
                          p["g_o"], p["beta_o"])


def _reference_encoder(h, mask, params, num_heads, output_all_encoded_layers=True):
    outs = []
    for p in params:
        h = _reference_layer(h, mask, p, num_heads)
        if output_all_encoded_layers:
            outs.append(h)
    if not output_all_encoded_layers:
        outs.append(h)
    return outs


# --------------------------------------------------------------------------
# Test
# --------------------------------------------------------------------------
def _init_layer_params(key, H, I):
    ks = jax.random.split(key, 16)
    sh, si = 1.0 / math.sqrt(H), 1.0 / math.sqrt(I)
    n = jax.random.normal
    return {
        "wq": n(ks[0], (H, H), jnp.float32) * sh, "bq": n(ks[1], (H,), jnp.float32) * 0.02,
        "wk": n(ks[2], (H, H), jnp.float32) * sh, "bk": n(ks[3], (H,), jnp.float32) * 0.02,
        "wv": n(ks[4], (H, H), jnp.float32) * sh, "bv": n(ks[5], (H,), jnp.float32) * 0.02,
        "w_ao": n(ks[6], (H, H), jnp.float32) * sh, "b_ao": n(ks[7], (H,), jnp.float32) * 0.02,
        "g_ao": 1.0 + 0.1 * n(ks[8], (H,), jnp.float32),
        "beta_ao": 0.02 * n(ks[9], (H,), jnp.float32),
        "wi": n(ks[10], (H, I), jnp.float32) * sh, "bi": n(ks[11], (I,), jnp.float32) * 0.02,
        "w_o": n(ks[12], (I, H), jnp.float32) * si, "b_o": n(ks[13], (H,), jnp.float32) * 0.02,
        "g_o": 1.0 + 0.1 * n(ks[14], (H,), jnp.float32),
        "beta_o": 0.02 * n(ks[15], (H,), jnp.float32),
    }


if __name__ == "__main__":
    # Make the f32 correctness check insensitive to the TPU's default bf16-pass
    # matmul behaviour (applies to both the reference and the kernel trace).
    jax.config.update("jax_default_matmul_precision", "highest")

    B, S, H, NUM_HEADS, NUM_LAYERS = 2, 8, 32, 4, 2
    INTER = 2 * H

    key = jax.random.PRNGKey(0)
    k_hid, k_mask, k_layers = jax.random.split(key, 3)

    hidden = jax.random.normal(k_hid, (B, S, H), dtype=jnp.float32)
    # BERT-style additive mask: 0 for attended positions, -10000 for masked.
    mask_bits = (jax.random.uniform(k_mask, (B, S)) > 0.2).astype(jnp.float32)
    attn_mask = (1.0 - mask_bits) * -10000.0

    raw_params = [_init_layer_params(k, H, INTER)
                  for k in jax.random.split(k_layers, NUM_LAYERS)]
    prepared = [prepare_layer_params(p, NUM_HEADS) for p in raw_params]

    refs = _reference_encoder(hidden, attn_mask, raw_params, NUM_HEADS,
                              output_all_encoded_layers=True)

    # ---- f32 path: tight correctness check ----------------------------------
    outs32 = bert_encoder(hidden, attn_mask, prepared, NUM_HEADS,
                          output_all_encoded_layers=True,
                          compute_dtype=jnp.float32)
    outs32 = jax.block_until_ready(outs32)
    assert len(outs32) == NUM_LAYERS
    for i, (o, r) in enumerate(zip(outs32, refs)):
        assert o.shape == (B, S, H)
        assert jnp.allclose(o, r, atol=5e-3, rtol=5e-3), f"f32 layer {i} mismatch"

    # ---- default bf16-matmul path: sanity check (loose tolerance) -----------
    outs_bf = bert_encoder(hidden, attn_mask, prepared, NUM_HEADS,
                           output_all_encoded_layers=True)   # compute_dtype=bf16
    outs_bf = jax.block_until_ready(outs_bf)
    for i, (o, r) in enumerate(zip(outs_bf, refs)):
        assert o.shape == (B, S, H)
        err = float(jnp.max(jnp.abs(o.astype(jnp.float32) - r)))
        assert err < 0.25, f"bf16 layer {i} max abs err {err}"

    print("KERNEL_OK")
</pallas_src>

<mosaic_0001>
module attributes {stable_mosaic.version = 11 : i64} {
  func.func @_attn_selfout_kernel(%arg0: i32, %arg1: memref<1x8x32xf32, #tpu.memory_space<vmem>>, %arg2: memref<32x32xf32, #tpu.memory_space<vmem>>, %arg3: memref<32x32xf32, #tpu.memory_space<vmem>>, %arg4: memref<32x32xf32, #tpu.memory_space<vmem>>, %arg5: memref<32x32xf32, #tpu.memory_space<vmem>>, %arg6: memref<1x32xf32, #tpu.memory_space<vmem>>, %arg7: memref<1x32xf32, #tpu.memory_space<vmem>>, %arg8: memref<1x32xf32, #tpu.memory_space<vmem>>, %arg9: memref<1x32xf32, #tpu.memory_space<vmem>>, %arg10: memref<1x32xf32, #tpu.memory_space<vmem>>, %arg11: memref<1x32xf32, #tpu.memory_space<vmem>>, %arg12: memref<1x1x8xf32, #tpu.memory_space<vmem>>, %arg13: memref<1x8x32xf32, #tpu.memory_space<vmem>>) attributes {dimension_semantics = [#tpu.dimension_semantics<parallel>], iteration_bounds = array<i64: 2>, scalar_prefetch = 0 : i64, scratch_operands = 0 : i64, tpu.core_type = #tpu.core_type<tc>, window_params = [{transform_indices = @transform_0, window_bounds = array<i64: 1, 8, 32>}, {pipeline_mode = #tpu.pipeline_mode<synchronous>, transform_indices = @transform_1, window_bounds = array<i64: 32, 32>}, {pipeline_mode = #tpu.pipeline_mode<synchronous>, transform_indices = @transform_2, window_bounds = array<i64: 32, 32>}, {pipeline_mode = #tpu.pipeline_mode<synchronous>, transform_indices = @transform_3, window_bounds = array<i64: 32, 32>}, {pipeline_mode = #tpu.pipeline_mode<synchronous>, transform_indices = @transform_4, window_bounds = array<i64: 32, 32>}, {pipeline_mode = #tpu.pipeline_mode<synchronous>, transform_indices = @transform_5, window_bounds = array<i64: 1, 32>}, {pipeline_mode = #tpu.pipeline_mode<synchronous>, transform_indices = @transform_6, window_bounds = array<i64: 1, 32>}, {pipeline_mode = #tpu.pipeline_mode<synchronous>, transform_indices = @transform_7, window_bounds = array<i64: 1, 32>}, {pipeline_mode = #tpu.pipeline_mode<synchronous>, transform_indices = @transform_8, window_bounds = array<i64: 1, 32>}, {pipeline_mode = #tpu.pipeline_mode<synchronous>, transform_indices = @transform_9, window_bounds = array<i64: 1, 32>}, {pipeline_mode = #tpu.pipeline_mode<synchronous>, transform_indices = @transform_10, window_bounds = array<i64: 1, 32>}, {transform_indices = @transform_11, window_bounds = array<i64: 1, 1, 8>}, {transform_indices = @transform_12, window_bounds = array<i64: 1, 8, 32>}]} {
    %c0 = arith.constant 0 : index
    %c0_0 = arith.constant 0 : index
    %c0_1 = arith.constant 0 : index
    %0 = vector.load %arg1[%c0, %c0_0, %c0_1] : memref<1x8x32xf32, #tpu.memory_space<vmem>>, vector<1x8x32xf32>
    %1 = vector.shape_cast %0 : vector<1x8x32xf32> to vector<8x32xf32>
    %c0_2 = arith.constant 0 : index
    %c0_3 = arith.constant 0 : index
    %2 = vector.load %arg2[%c0_2, %c0_3] : memref<32x32xf32, #tpu.memory_space<vmem>>, vector<32x32xf32>
    %cst = arith.constant dense<0.000000e+00> : vector<8x32xf32>
    %3 = tpu.matmul %1, %2, %cst {dimension_numbers = #tpu.dot_dimension_numbers<[1], [0], [0], [1], [0, 0, 1, 1], [], []>, precision = #tpu.contract_precision<fp32>} : vector<8x32xf32>, vector<32x32xf32>, vector<8x32xf32> -> vector<8x32xf32>
    %c0_4 = arith.constant 0 : index
    %c0_5 = arith.constant 0 : index
    %4 = vector.load %arg6[%c0_4, %c0_5] : memref<1x32xf32, #tpu.memory_space<vmem>>, vector<1x32xf32>
    %5 = vector.broadcast %4 : vector<1x32xf32> to vector<8x32xf32>
    %6 = arith.addf %3, %5 : vector<8x32xf32>
    %7 = vector.shape_cast %6 : vector<8x32xf32> to vector<8x4x8xf32>
    %8 = tpu.transpose %7, [1, 0, 2] : vector<8x4x8xf32> -> vector<4x8x8xf32>
    %c0_6 = arith.constant 0 : index
    %c0_7 = arith.constant 0 : index
    %9 = vector.load %arg3[%c0_6, %c0_7] : memref<32x32xf32, #tpu.memory_space<vmem>>, vector<32x32xf32>
    %cst_8 = arith.constant dense<0.000000e+00> : vector<8x32xf32>
    %10 = tpu.matmul %1, %9, %cst_8 {dimension_numbers = #tpu.dot_dimension_numbers<[1], [0], [0], [1], [0, 0, 1, 1], [], []>, precision = #tpu.contract_precision<fp32>} : vector<8x32xf32>, vector<32x32xf32>, vector<8x32xf32> -> vector<8x32xf32>
    %c0_9 = arith.constant 0 : index
    %c0_10 = arith.constant 0 : index
    %11 = vector.load %arg7[%c0_9, %c0_10] : memref<1x32xf32, #tpu.memory_space<vmem>>, vector<1x32xf32>
    %12 = vector.broadcast %11 : vector<1x32xf32> to vector<8x32xf32>
    %13 = arith.addf %10, %12 : vector<8x32xf32>
    %14 = vector.shape_cast %13 : vector<8x32xf32> to vector<8x4x8xf32>
    %15 = tpu.transpose %14, [1, 0, 2] : vector<8x4x8xf32> -> vector<4x8x8xf32>
    %c0_11 = arith.constant 0 : index
    %c0_12 = arith.constant 0 : index
    %16 = vector.load %arg4[%c0_11, %c0_12] : memref<32x32xf32, #tpu.memory_space<vmem>>, vector<32x32xf32>
    %cst_13 = arith.constant dense<0.000000e+00> : vector<8x32xf32>
    %17 = tpu.matmul %1, %16, %cst_13 {dimension_numbers = #tpu.dot_dimension_numbers<[1], [0], [0], [1], [0, 0, 1, 1], [], []>, precision = #tpu.contract_precision<fp32>} : vector<8x32xf32>, vector<32x32xf32>, vector<8x32xf32> -> vector<8x32xf32>
    %c0_14 = arith.constant 0 : index
    %c0_15 = arith.constant 0 : index
    %18 = vector.load %arg8[%c0_14, %c0_15] : memref<1x32xf32, #tpu.memory_space<vmem>>, vector<1x32xf32>
    %19 = vector.broadcast %18 : vector<1x32xf32> to vector<8x32xf32>
    %20 = arith.addf %17, %19 : vector<8x32xf32>
    %21 = vector.shape_cast %20 : vector<8x32xf32> to vector<8x4x8xf32>
    %22 = tpu.transpose %21, [1, 0, 2] : vector<8x4x8xf32> -> vector<4x8x8xf32>
    %cst_16 = arith.constant dense<0.000000e+00> : vector<4x8x8xf32>
    %23 = tpu.matmul %8, %15, %cst_16 {dimension_numbers = #tpu.dot_dimension_numbers<[2], [2], [1], [1], [0, 0, 0, 1, 1, 1], [0], [0]>, precision = #tpu.contract_precision<fp32>} : vector<4x8x8xf32>, vector<4x8x8xf32>, vector<4x8x8xf32> -> vector<4x8x8xf32>
    %c0_17 = arith.constant 0 : index
    %c0_18 = arith.constant 0 : index
    %c0_19 = arith.constant 0 : index
    %24 = vector.load %arg12[%c0_17, %c0_18, %c0_19] : memref<1x1x8xf32, #tpu.memory_space<vmem>>, vector<1x1x8xf32>
    %25 = vector.broadcast %24 : vector<1x1x8xf32> to vector<4x8x8xf32>
    %26 = arith.addf %23, %25 : vector<4x8x8xf32>
    %cst_20 = arith.constant dense<0xFF800000> : vector<4x8xf32>
    %27 = vector.multi_reduction <maximumf>, %26, %cst_20 [2] : vector<4x8x8xf32> to vector<4x8xf32>
    %28 = vector.shape_cast %27 : vector<4x8xf32> to vector<4x8x1xf32>
    %29 = vector.broadcast %28 : vector<4x8x1xf32> to vector<4x8x8xf32>
    %30 = arith.subf %26, %29 : vector<4x8x8xf32>
    %31 = math.exp %30 : vector<4x8x8xf32>
    %cst_21 = arith.constant dense<0.000000e+00> : vector<4x8xf32>
    %32 = vector.multi_reduction <add>, %31, %cst_21 [2] : vector<4x8x8xf32> to vector<4x8xf32>
    %33 = vector.shape_cast %32 : vector<4x8xf32> to vector<4x8x1xf32>
    %cst_22 = arith.constant 1.000000e+00 : f32
    %34 = vector.broadcast %cst_22 : f32 to vector<4x8x1xf32>
    %35 = arith.divf %34, %33 : vector<4x8x1xf32>
    %36 = vector.broadcast %35 : vector<4x8x1xf32> to vector<4x8x8xf32>
    %37 = arith.mulf %31, %36 : vector<4x8x8xf32>
    %cst_23 = arith.constant dense<0.000000e+00> : vector<4x8x8xf32>
    %38 = tpu.matmul %37, %22, %cst_23 {dimension_numbers = #tpu.dot_dimension_numbers<[2], [1], [1], [2], [0, 0, 0, 1, 1, 2], [0], [0]>, precision = #tpu.contract_precision<fp32>} : vector<4x8x8xf32>, vector<4x8x8xf32>, vector<4x8x8xf32> -> vector<4x8x8xf32>
    %39 = tpu.transpose %38, [1, 0, 2] : vector<4x8x8xf32> -> vector<8x4x8xf32>
    %40 = vector.shape_cast %39 : vector<8x4x8xf32> to vector<8x32xf32>
    %c0_24 = arith.constant 0 : index
    %c0_25 = arith.constant 0 : index
    %41 = vector.load %arg5[%c0_24, %c0_25] : memref<32x32xf32, #tpu.memory_space<vmem>>, vector<32x32xf32>
    %cst_26 = arith.constant dense<0.000000e+00> : vector<8x32xf32>
    %42 = tpu.matmul %40, %41, %cst_26 {dimension_numbers = #tpu.dot_dimension_numbers<[1], [0], [0], [1], [0, 0, 1, 1], [], []>, precision = #tpu.contract_precision<fp32>} : vector<8x32xf32>, vector<32x32xf32>, vector<8x32xf32> -> vector<8x32xf32>
    %c0_27 = arith.constant 0 : index
    %c0_28 = arith.constant 0 : index
    %43 = vector.load %arg9[%c0_27, %c0_28] : memref<1x32xf32, #tpu.memory_space<vmem>>, vector<1x32xf32>
    %44 = vector.broadcast %43 : vector<1x32xf32> to vector<8x32xf32>
    %45 = arith.addf %42, %44 : vector<8x32xf32>
    %46 = arith.addf %45, %1 : vector<8x32xf32>
    %cst_29 = arith.constant dense<0.000000e+00> : vector<8xf32>
    %47 = vector.multi_reduction <add>, %46, %cst_29 [1] : vector<8x32xf32> to vector<8xf32>
    %48 = vector.shape_cast %47 : vector<8xf32> to vector<8x1xf32>
    %cst_30 = arith.constant 3.200000e+01 : f32
    %49 = vector.broadcast %cst_30 : f32 to vector<8x1xf32>
    %50 = arith.divf %48, %49 : vector<8x1xf32>
    %51 = vector.broadcast %50 : vector<8x1xf32> to vector<8x32xf32>
    %52 = arith.subf %46, %51 : vector<8x32xf32>
    %53 = arith.mulf %52, %52 : vector<8x32xf32>
    %cst_31 = arith.constant dense<0.000000e+00> : vector<8xf32>
    %54 = vector.multi_reduction <add>, %53, %cst_31 [1] : vector<8x32xf32> to vector<8xf32>
    %55 = vector.shape_cast %54 : vector<8xf32> to vector<8x1xf32>
    %cst_32 = arith.constant 3.200000e+01 : f32
    %56 = vector.broadcast %cst_32 : f32 to vector<8x1xf32>
    %57 = arith.divf %55, %56 : vector<8x1xf32>
    %cst_33 = arith.constant 9.99999996E-13 : f32
    %58 = vector.broadcast %cst_33 : f32 to vector<8x1xf32>
    %59 = arith.addf %57, %58 : vector<8x1xf32>
    %60 = math.rsqrt %59 : vector<8x1xf32>
    %61 = vector.broadcast %60 : vector<8x1xf32> to vector<8x32xf32>
    %62 = arith.mulf %52, %61 : vector<8x32xf32>
    %c0_34 = arith.constant 0 : index
    %c0_35 = arith.constant 0 : index
    %63 = vector.load %arg10[%c0_34, %c0_35] : memref<1x32xf32, #tpu.memory_space<vmem>>, vector<1x32xf32>
    %64 = vector.broadcast %63 : vector<1x32xf32> to vector<8x32xf32>
    %65 = arith.mulf %62, %64 : vector<8x32xf32>
    %c0_36 = arith.constant 0 : index
    %c0_37 = arith.constant 0 : index
    %66 = vector.load %arg11[%c0_36, %c0_37] : memref<1x32xf32, #tpu.memory_space<vmem>>, vector<1x32xf32>
    %67 = vector.broadcast %66 : vector<1x32xf32> to vector<8x32xf32>
    %68 = arith.addf %65, %67 : vector<8x32xf32>
    %c0_38 = arith.constant 0 : index
    %c0_39 = arith.constant 0 : index
    %c0_40 = arith.constant 0 : index
    %69 = vector.load %arg13[%c0_38, %c0_39, %c0_40] : memref<1x8x32xf32, #tpu.memory_space<vmem>>, vector<1x8x32xf32>
    %70 = vector.shape_cast %69 : vector<1x8x32xf32> to vector<8x32xf32>
    %71 = vector.shape_cast %68 : vector<8x32xf32> to vector<1x8x32xf32>
    tpu.vector_store %arg13[%c0_38, %c0_39, %c0_40], %71 {strides = array<i32>} : memref<1x8x32xf32, #tpu.memory_space<vmem>>, vector<1x8x32xf32>,
    return
  }
  func.func @transform_0(%arg0: i32) -> (i32, i32, i32) {
    %c0_i32 = arith.constant 0 : i32
    %c0_i32_0 = arith.constant 0 : i32
    %c0_i32_1 = arith.constant 0 : i32
    return %arg0, %c0_i32, %c0_i32_0 : i32, i32, i32
  }
  func.func @transform_1(%arg0: i32) -> (i32, i32) {
    %c0_i32 = arith.constant 0 : i32
    %c0_i32_0 = arith.constant 0 : i32
    %c0_i32_1 = arith.constant 0 : i32
    return %c0_i32, %c0_i32_0 : i32, i32
  }
  func.func @transform_2(%arg0: i32) -> (i32, i32) {
    %c0_i32 = arith.constant 0 : i32
    %c0_i32_0 = arith.constant 0 : i32
    %c0_i32_1 = arith.constant 0 : i32
    return %c0_i32, %c0_i32_0 : i32, i32
  }
  func.func @transform_3(%arg0: i32) -> (i32, i32) {
    %c0_i32 = arith.constant 0 : i32
    %c0_i32_0 = arith.constant 0 : i32
    %c0_i32_1 = arith.constant 0 : i32
    return %c0_i32, %c0_i32_0 : i32, i32
  }
  func.func @transform_4(%arg0: i32) -> (i32, i32) {
    %c0_i32 = arith.constant 0 : i32
    %c0_i32_0 = arith.constant 0 : i32
    %c0_i32_1 = arith.constant 0 : i32
    return %c0_i32, %c0_i32_0 : i32, i32
  }
  func.func @transform_5(%arg0: i32) -> (i32, i32) {
    %c0_i32 = arith.constant 0 : i32
    %c0_i32_0 = arith.constant 0 : i32
    %c0_i32_1 = arith.constant 0 : i32
    return %c0_i32, %c0_i32_0 : i32, i32
  }
  func.func @transform_6(%arg0: i32) -> (i32, i32) {
    %c0_i32 = arith.constant 0 : i32
    %c0_i32_0 = arith.constant 0 : i32
    %c0_i32_1 = arith.constant 0 : i32
    return %c0_i32, %c0_i32_0 : i32, i32
  }
  func.func @transform_7(%arg0: i32) -> (i32, i32) {
    %c0_i32 = arith.constant 0 : i32
    %c0_i32_0 = arith.constant 0 : i32
    %c0_i32_1 = arith.constant 0 : i32
    return %c0_i32, %c0_i32_0 : i32, i32
  }
  func.func @transform_8(%arg0: i32) -> (i32, i32) {
    %c0_i32 = arith.constant 0 : i32
    %c0_i32_0 = arith.constant 0 : i32
    %c0_i32_1 = arith.constant 0 : i32
    return %c0_i32, %c0_i32_0 : i32, i32
  }
  func.func @transform_9(%arg0: i32) -> (i32, i32) {
    %c0_i32 = arith.constant 0 : i32
    %c0_i32_0 = arith.constant 0 : i32
    %c0_i32_1 = arith.constant 0 : i32
    return %c0_i32, %c0_i32_0 : i32, i32
  }
  func.func @transform_10(%arg0: i32) -> (i32, i32) {
    %c0_i32 = arith.constant 0 : i32
    %c0_i32_0 = arith.constant 0 : i32
    %c0_i32_1 = arith.constant 0 : i32
    return %c0_i32, %c0_i32_0 : i32, i32
  }
  func.func @transform_11(%arg0: i32) -> (i32, i32, i32) {
    %c0_i32 = arith.constant 0 : i32
    %c0_i32_0 = arith.constant 0 : i32
    %c0_i32_1 = arith.constant 0 : i32
    return %arg0, %c0_i32, %c0_i32_0 : i32, i32, i32
  }
  func.func @transform_12(%arg0: i32) -> (i32, i32, i32) {
    %c0_i32 = arith.constant 0 : i32
    %c0_i32_0 = arith.constant 0 : i32
    %c0_i32_1 = arith.constant 0 : i32
    return %arg0, %c0_i32, %c0_i32_0 : i32, i32, i32
  }
}

</mosaic_0001>

<bundles_post_ra>
// kernel: tpu_custom_call.1
= control target key start
LH: loop header
LB: loop body
LE: loop exit
PB: predicated region body
PF: predicated region fallthrough
CT: control target
= control target key end

     0   :  { %s9263_s0 = inlined_call_operand.hbm [shape: f32[2,8,32], index: 0, kind: input, shape index: {}]   ;;  %s9264_s1 = inlined_call_operand.hbm [shape: f32[32,32], index: 1, kind: input, shape index: {}]   ;;  %s9265_s2 = inlined_call_operand.hbm [shape: f32[32,32], index: 2, kind: input, shape index: {}]   ;;  %s9266_s3 = inlined_call_operand.hbm [shape: f32[32,32], index: 3, kind: input, shape index: {}]   ;;  %s9267_s4 = inlined_call_operand.hbm [shape: f32[32,32], index: 4, kind: input, shape index: {}]   ;;  %s9268_s5 = inlined_call_operand.vmem [shape: f32[1,32], index: 5, kind: input, shape index: {}]   ;;  %s9269_s6 = inlined_call_operand.vmem [shape: f32[1,32], index: 6, kind: input, shape index: {}]   ;;  %s9270_s7 = inlined_call_operand.vmem [shape: f32[1,32], index: 7, kind: input, shape index: {}]   ;;  %s9271_s8 = inlined_call_operand.vmem [shape: f32[1,32], index: 8, kind: input, shape index: {}]   ;;  %s9272_s9 = inlined_call_operand.vmem [shape: f32[1,32], index: 9, kind: input, shape index: {}]   ;;  %s9273_s10 = inlined_call_operand.vmem [shape: f32[1,32], index: 10, kind: input, shape index: {}]   ;;  %s9274_s11 = inlined_call_operand.vmem [shape: f32[2,1,8], index: 11, kind: input, shape index: {}]   ;;  %s9275_s12 = inlined_call_operand.hbm [shape: f32[2,8,32], index: 12, kind: output, shape index: {}]  }
   0x1   :  { %9280 = sst [smem:[#allocation16_spill]] %s9263_s0 }
   0x2   :  { %9281 = sst [smem:[#allocation17_spill]] %s9264_s1 }
   0x3   :  { %9282 = sst [smem:[#allocation18_spill]] %s9271_s8 }
   0x4   :  { %9283 = sst [smem:[#allocation19_spill]] %s9272_s9 }
   0x5   :  { %9284 = sst [smem:[#allocation20_spill]] %s9273_s10 }
   0x6   :  { %9285 = sst [smem:[#allocation21_spill]] %s9275_s12 }
   0x7   :  { %17 = vsyncpa [#allocation3], 0 }
   0x8   :  { %19 = vsyncpa [#allocation3 + $0x1], 0 }
   0x9   :  { %20 = vsyncpa [#allocation6], 0 }
   0xa   :  { %21 = vsyncpa [#allocation9], 0 }
   0xb   :  { %22 = vsyncpa [#allocation4], 0 }
   0xc   :  { %24 = vsyncpa [#allocation4 + $0x1], 0  ;;  %s8344_s21 = smov 0   ;;  %s8346_s22 = smov 0  }
   0xd   :  { %s8348_s23 = smov 0   ;;  %s8350_s24 = smov 0  }
   0xe LB: > { %s8260_s25 = smov [#allocation5]   ;;  %s8365_s27 = sadd.s32 4294967295, %s8258_s24   ;;  %s8258_s24 = sphi %s8350_s24, %s9312_s24   ;;  %s8254_s23 = sphi %s8348_s23, %s9311_s23   ;;  %s8250_s22 = sphi %s8346_s22, %s9310_s22   ;;  %s8246_s21 = sphi %s8344_s21, %s9309_s21  }
   0xf   : > { %s335_s26 = sshll.u32 %s8260_s25, 4  ;;  %p6908_p0 = scmp.ge.s32.totalorder %s8258_s24, 1  ;;  %s8370_s26 = int_to_ptr.vmem [resolvable:$true] %s335_s26 }
  0x10   : > { %p9277_p1 = scmp.eq.s32.totalorder %s8365_s27, 0  ;;  %p323_p2 = scmp.lt.s32.totalorder %s8258_s24, 3 }
  0x11   : > { %s8261_s29 = smov [#allocation8]   ;;  %s8262_s14 = smov [#allocation7]  }
  0x12   : > { %p8372_p3 = pnand %p6908_p0, %p323_p2  ;;  %s361_s30 = sshll.u32 %s8261_s29, 4  ;;  %s8385_s30 = int_to_ptr.vmem [resolvable:$true] %s361_s30 }
  0x13   : > { %s348_s15 = sshll.u32 %s8262_s14, 4  ;;  %s9288_s1 = sld [smem:[#allocation17_spill]]  ;;  %s8387_s15 = int_to_ptr.vmem [resolvable:$true] %s348_s15 }
  0x14   : > { %s9286_s28 = scalar_select %p8372_p3, 1, 0 }
  0x15   : > { %p7943_p5 = pneg %p8372_p3 }
  0x17   : > { %p8381_p6 = pnand %p7943_p5, %p9277_p1 }
  0x19   : > { %s8042_s18 = scalar_lea.hbm %s9288_s1, 512  ;;  %p8397_p8 = pneg %p8381_p6 }
  0x1a   : > { %p8043_p7 = scmp.ne.s32.totalorder %s9288_s1, %s8042_s18  ;;  %p8049_p11 = scmp.lt.u32.totalorder %s8042_s18, %s9288_s1 }
  0x1c   : > { %p8045_p9 = pnand %p8397_p8, %p8043_p7 }
  0x1e   : > { %p8046_p10 = pneg %p8045_p9 }
  0x20   : > { %p8051_p12 = pnand %p8049_p11, %p8046_p10 }
  0x22   : > { %8054 = shalt.err (!%p8051_p12)
}
  0x23   : > { %s8055_s16 = scalar_lea.vmem %s8370_s26, 512  ;;  %p8063_p5 = scmp.lt.s32.totalorder %s8370_s26, %s8370_s26 }
  0x24   : > { %p8056_p13 = scmp.ne.s32.totalorder %s8370_s26, %s8055_s16  ;;  %p8064_p4 = scmp.lt.s32.totalorder %s8055_s16, %s8055_s16 }
  0x26   : > { %p8058_p0 = pnand %p8056_p13, %p8397_p8  ;;  %p8065_p7 = por %p8064_p4, %p8063_p5 }
  0x28   : > { %p8059_p2 = pneg %p8058_p0 }
  0x2a   : > { %p8066_p9 = pnand %p8065_p7, %p8059_p2 }
  0x2c   : > { %8069 = shalt.err (!%p8066_p9)
}
  0x2d   : > { %s8263_s17 = smov 128   ;;  %s8264_s18 = smov 8  }
  0x2e   : > { %7946 = dma.hbm_to_vmem [thread:$0]  (!%p8381_p6), %s9288_s1, 512, %s8370_s26, [#allocation6], %s8263_s17, %s8263_s17, %s8264_s18  }
  0x2f   : > { %s8070_s16 = scalar_lea.hbm %s9266_s3, 512 }
  0x30   : > { %p8071_p4 = scmp.ne.s32.totalorder %s9266_s3, %s8070_s16  ;;  %p8077_p12 = scmp.lt.u32.totalorder %s8070_s16, %s9266_s3 }
  0x32   : > { %p8073_p10 = pnand %p8071_p4, %p8397_p8 }
  0x34   : > { %p8074_p11 = pneg %p8073_p10 }
  0x36   : > { %p8079_p13 = pnand %p8077_p12, %p8074_p11 }
  0x38   : > { %8082 = shalt.err (!%p8079_p13)
}
  0x39   : > { %s8083_s26 = scalar_lea.vmem %s8385_s30, 512  ;;  %p8091_p7 = scmp.lt.s32.totalorder %s8385_s30, %s8385_s30 }
  0x3a   : > { %p8084_p0 = scmp.ne.s32.totalorder %s8385_s30, %s8083_s26  ;;  %p8092_p9 = scmp.lt.s32.totalorder %s8083_s26, %s8083_s26 }
  0x3c   : > { %p8086_p2 = pnand %p8084_p0, %p8397_p8  ;;  %p8093_p4 = por %p8092_p9, %p8091_p7 }
  0x3e   : > { %p8087_p5 = pneg %p8086_p2 }
  0x40   : > { %p8094_p10 = pnand %p8093_p4, %p8087_p5 }
  0x42   : > { %8097 = shalt.err (!%p8094_p10)
}
  0x43   : > { %7952 = dma.hbm_to_vmem [thread:$0]  (!%p8381_p6), %s9266_s3, 512, %s8385_s30, [#allocation9], %s8263_s17, %s8263_s17, %s8264_s18  }
  0x44   : > { %s8098_s19 = scalar_lea.hbm %s9265_s2, 512 }
  0x45   : > { %p8099_p11 = scmp.ne.s32.totalorder %s9265_s2, %s8098_s19  ;;  %p8105_p0 = scmp.lt.u32.totalorder %s8098_s19, %s9265_s2 }
  0x47   : > { %p8101_p12 = pnand %p8099_p11, %p8397_p8 }
  0x49   : > { %p8102_p13 = pneg %p8101_p12 }
  0x4b   : > { %p8107_p2 = pnand %p8105_p0, %p8102_p13 }
  0x4d   : > { %8110 = shalt.err (!%p8107_p2)
}
  0x4e   : > { %s8111_s30 = scalar_lea.vmem %s8387_s15, 512  ;;  %p8119_p4 = scmp.lt.s32.totalorder %s8387_s15, %s8387_s15 }
  0x4f   : > { %p8112_p5 = scmp.ne.s32.totalorder %s8387_s15, %s8111_s30  ;;  %p8120_p10 = scmp.lt.s32.totalorder %s8111_s30, %s8111_s30 }
  0x51   : > { %p8114_p7 = pnand %p8112_p5, %p8397_p8  ;;  %p8121_p11 = por %p8120_p10, %p8119_p4 }
  0x53   : > { %p8115_p9 = pneg %p8114_p7 }
  0x55   : > { %p8122_p12 = pnand %p8121_p11, %p8115_p9 }
  0x57   : > { %8125 = shalt.err (!%p8122_p12)
}
  0x58   : > { %7949 = dma.hbm_to_vmem [thread:$0]  (!%p8381_p6), %s9265_s2, 512, %s8387_s15, [#allocation6], %s8263_s17, %s8263_s17, %s8264_s18  }
  0x59   : > { %s8265_s9 = smov [#allocation10]   ;;  %s8126_s20 = scalar_lea.hbm %s9267_s4, 512 }
  0x5a   : > { %s374_s10 = sshll.u32 %s8265_s9, 4  ;;  %p8127_p13 = scmp.ne.s32.totalorder %s9267_s4, %s8126_s20  ;;  %s375_s10 = int_to_ptr.vmem [resolvable:$true] %s374_s10 }
  0x5b   : > { %p8133_p5 = scmp.lt.u32.totalorder %s8126_s20, %s9267_s4 }
  0x5c   : > { %p8129_p0 = pnand %p8127_p13, %p8397_p8 }
  0x5e   : > { %p8130_p2 = pneg %p8129_p0 }
  0x60   : > { %p8135_p7 = pnand %p8133_p5, %p8130_p2 }
  0x62   : > { %8138 = shalt.err (!%p8135_p7)
}
  0x63   : > { %s8139_s15 = scalar_lea.vmem %s375_s10, 512  ;;  %p8147_p11 = scmp.lt.s32.totalorder %s375_s10, %s375_s10 }
  0x64   : > { %p8140_p9 = scmp.ne.s32.totalorder %s375_s10, %s8139_s15  ;;  %p8148_p12 = scmp.lt.s32.totalorder %s8139_s15, %s8139_s15 }
  0x66   : > { %p8142_p4 = pnand %p8140_p9, %p8397_p8  ;;  %p8149_p1 = por %p8148_p12, %p8147_p11 }
  0x68   : > { %p8143_p10 = pneg %p8142_p4 }
  0x6a   : > { %p8150_p3 = pnand %p8149_p1, %p8143_p10 }
  0x6c   : > { %8153 = shalt.err (!%p8150_p3)
}
  0x6d   : > { %7955 = dma.hbm_to_vmem [thread:$0]  (!%p8381_p6), %s9267_s4, 512, %s375_s10, [#allocation9], %s8263_s17, %s8263_s17, %s8264_s18  }
  0x6e   : > { %s6907_s13 = sadd.s32 4294967294, %s8258_s24   ;;  %s8496_s25 = sadd.s32 1, %s8258_s24  }
  0x6f   : > { %s34_s9 = ssub.s32 %s8258_s24, %s8496_s25  ;;  %s37_s12 = sadd.s32 1, %s8254_s23 }
  0x70   : > { %p35_p1 = scmp.eq.s32.totalorder %s34_s9, 0  ;;  %p44_p3 = scmp.ne.s32.totalorder %s8254_s23, %s8250_s22 }
  0x71   : > { %p45_p8 = scmp.eq.s32.totalorder %s8258_s24, 0  ;;  %p50_p13 = scmp.ne.s32.totalorder %s8250_s22, %s8246_s21 }
  0x72   : > { %s8507_s19 = scalar_select %p35_p1, %s8254_s23, %s37_s12  }
  0x73   : > { %p8509_p0 = por %p45_p8, %p44_p3  ;;  %p9291_p2 = scmp.eq.s32.totalorder %s8365_s27, 0 }
  0x74   : > { %p310_p5 = scmp.eq.s32.totalorder %s8365_s27, 1  ;;  %p316_p7 = scmp.eq.s32.totalorder %s6907_s13, 1 }
  0x75   : > { %p8515_p6 = por %p9291_p2, %p50_p13  ;;  %p7968_p9 = scmp.lt.s32.totalorder %s8258_s24, 2 }
  0x76   : > { %s406_s18 = sand.u32 1, %s8254_s23   ;;  %p8522_p4 = por %p310_p5, %p44_p3 }
  0x77   : > { %p8526_p10 = por %p316_p7, %p50_p13  ;;  %s6914_s14 = sshll.u32 %s406_s18, 3 }
  0x78   : > { %s9293_s10 = scalar_select %p8522_p4, 1, 0 }
  0x79   : > { %s9294_s29 = scalar_select %p8526_p10, 1, 0 }
  0x7a   : > { %s6915_s16 = sshll.u32 %s8258_s24, 7  ;;  %s9295_s0 = sld [smem:[#allocation16_spill]] }
  0x7b   : > { %s410_s8 = scalar_lea.vmem [#allocation2], %s6914_s14  ;;  %p8540_p11 = pnand %p7968_p9, %p8509_p0 }
  0x7c   : > { %s417_s13 = sshll.u32 %s410_s8, 4  ;;  %s407_s12 = scalar_lea.sflag [#allocation3], %s406_s18  ;;  %s8536_s13 = int_to_ptr.vmem [resolvable:$true] %s417_s13 }
  0x7d   : > { %p8156_p1 = pneg %p8540_p11 }
  0x80   : > { %s8534_s26 = scalar_lea.hbm %s9295_s0, %s6915_s16  ;;  %s8159_s30 = scalar_lea.hbm %s9295_s0, 256 }
  0x81   : > { %s8154_s1 = scalar_lea.hbm %s8534_s26, 128  ;;  %p8160_p13 = scmp.lt.u32.totalorder %s8534_s26, %s9295_s0 }
  0x82   : > { %p8155_p12 = scmp.ne.s32.totalorder %s8534_s26, %s8154_s1  ;;  %p8161_p0 = scmp.lt.u32.totalorder %s8159_s30, %s8154_s1 }
  0x83   : > { %p8163_p5 = scmp.lt.u32.totalorder %s8154_s1, %s8534_s26 }
  0x84   : > { %p8157_p3 = pnand %p8156_p1, %p8155_p12  ;;  %p8162_p2 = por %p8161_p0, %p8160_p13 }
  0x86   : > { %p8158_p8 = pneg %p8157_p3  ;;  %p8164_p7 = por %p8163_p5, %p8162_p2 }
  0x88   : > { %p8165_p9 = pnand %p8164_p7, %p8158_p8 }
  0x8a   : > { %8168 = shalt.err (!%p8165_p9)
}
  0x8b   : > { %s8169_s18 = scalar_lea.vmem %s8536_s13, 128  ;;  %s8266_s8 = smov [#allocation2]  }
  0x8c   : > { %p8170_p12 = scmp.ne.s32.totalorder %s8536_s13, %s8169_s18  ;;  %s8174_s14 = sshll.u32 %s8266_s8, 4  ;;  %s8175_s14 = int_to_ptr.vmem [resolvable:$false] %s8174_s14 }
  0x8d   : > { %s8176_s16 = scalar_lea.vmem %s8175_s14, 256  ;;  %p8177_p4 = scmp.lt.s32.totalorder %s8536_s13, %s8175_s14 }
  0x8e   : > { %p8172_p3 = pnand %p8170_p12, %p8156_p1  ;;  %p8178_p13 = scmp.lt.s32.totalorder %s8176_s16, %s8169_s18 }
  0x90   : > { %p8173_p10 = pneg %p8172_p3  ;;  %p8179_p0 = por %p8178_p13, %p8177_p4 }
  0x92   : > { %p8180_p2 = pnand %p8179_p0, %p8173_p10 }
  0x94   : > { %8183 = shalt.err (!%p8180_p2)
}
  0x95   : > { %7959 = dma.hbm_to_vmem [thread:$0]  (!%p8540_p11), %s8534_s26, 128, %s8536_s13, %s407_s12  }
  0x96   : > { %p9297_p8 = scmp.ne.s32.totalorder %s9286_s28, 0 }
  0x97   : > { %s8572_s1 = sand.u32 (!%p9297_p8), 1, %s8250_s22  }
  0x98   : > { %432 = sbr.rel (%p9297_p8) target bundleno = 2224 (0x8b0), region = 68  ;;  %s6917_s30 = sshll.u32 (!%p9297_p8), %s8572_s1, 3 }
  0x99   : > { %s435_s20 = scalar_lea.sflag (!%p9297_p8), [#allocation3], %s8572_s1  ;;  %s8578_s15 = scalar_lea.vmem (!%p9297_p8), [#allocation2], %s6917_s30 }
  0x9f   : > { %8229 = dma.done.wait (%p8515_p6), %s435_s20, 128  }
  0xa0   : > { %8231 = vsyncadd (%p8515_p6), %s435_s20, 4294967168  ;;  %p9298_p4 = scmp.eq.s32.totalorder %s8365_s27, 0 }
  0xa2   : > { %8233 = dma.done.wait (%p9298_p4), [#allocation6], 1024   ;;  %p9299_p10 = pmov %p9298_p4 }
  0xa3   : > { %p9300_p11 = pmov %p9298_p4 }
  0xa4   : > { %8235 = vsyncadd (%p9299_p10), [#allocation6], 4294966272 }
  0xa5   : > { %8237 = dma.done.wait (%p9300_p11), [#allocation9], 1024   ;;  %p9301_p1 = pmov %p9298_p4 }
  0xa6   : > { %v8267_v0 = vmov 0.0|0.0   ;;  %vm8268_vm0 = vmmov 0   ;;  %v8269_v1 = vmov 0.0   ;;  %v502_v2 = vld [vmem:[#allocation5] sm:$0xff]  ;;  %v503_v3 = vld [vmem:[#allocation5 + $0x8] sm:$0xff]  ;;  %vm513_vm1 = vcmask 261120  }
  0xa7   : > { %8239 = vsyncadd (%p9301_p1), [#allocation9], 4294966272  ;;  %7662 = vmatprep.subr.bf16.mxu0 %v8267_v0  ;;  %7698 = vmatprep.subr.bf16.mxu1 %v8267_v0  ;;  %v1148_v4 = vld [vmem:[#allocation7] sm:$0xff]  ;;  %v518_v5 = vand.u32 4294901760, %v502_v2  ;;  %v521_v6 = vand.u32 4294901760, %v503_v3  ;;  %v1149_v7 = vld [vmem:[#allocation7 + $0x8] sm:$0xff] }
  0xa8   : > { %7166 = vmatprep.mubr.msk.f32.mxu0 %vm8268_vm0, %v8269_v1  ;;  %7232 = vmatprep.mubr.msk.f32.mxu1 %vm8268_vm0, %v8269_v1  ;;  %v1160_v8 = vand.u32 4294901760, %v1148_v4  ;;  %v504_v9 = vld [vmem:[#allocation5 + $0x10] sm:$0xff]  ;;  %v505_v10 = vld [vmem:[#allocation5 + $0x18] sm:$0xff]  ;;  %v1163_v11 = vand.u32 4294901760, %v1149_v7  ;;  %s8270_s9 = smov 104   ;;  %s8271_s12 = smov 120  }
  0xa9   : > { %v524_v12 = vand.u32 4294901760, %v504_v9  ;;  %v527_v13 = vand.u32 4294901760, %v505_v10  ;;  %v1150_v14 = vld [vmem:[#allocation7 + $0x10] sm:$0xff]  ;;  %v1151_v15 = vld [vmem:[#allocation7 + $0x18] sm:$0xff]  ;;  %v8599_v17 = vpack.c.bf16 %v521_v6, %v518_v5  ;;  %v8601_v18 = vsub.f32 %v502_v2, %v518_v5  ;;  %s8272_s18 = smov 112   ;;  %p498_p6 = scmp.lt.s32.totalorder %s8365_s27, 1 }
  0xaa   : > { %v501_v16 = vld [vmem:[%s8578_s15] sm:$0xff]  ;;  %v8603_v19 = vsub.f32 %v503_v3, %v521_v6  ;;  %v8605_v20 = vsub.f32 %v1148_v4, %v1160_v8  ;;  %v8607_v21 = vpack.c.bf16 %v1163_v11, %v1160_v8  ;;  %v8609_v22 = vsub.f32 %v1149_v7, %v1163_v11  ;;  %v1790_v11 = vld [vmem:[#allocation8] sm:$0xff]  ;;  %s8275_s26 = smov 16   ;;  %s8276_s13 = smov 8  }
  0xab   : > { %v8611_v23 = vpack.c.bf16 %v527_v13, %v524_v12  ;;  %v8613_v24 = vsub.f32 %v504_v9, %v524_v12  ;;  %7664 = vmatpush3.bf16.msra.mxu0 %v8599_v17  ;;  %v8616_v25 = vsub.f32 %v505_v10, %v527_v13  ;;  %v1166_v26 = vand.u32 4294901760, %v1150_v14  ;;  %v1791_v12 = vld [vmem:[#allocation8 + $0x8] sm:$0xff]  ;;  %v1792_v13 = vld [vmem:[#allocation8 + $0x10] sm:$0xff]  ;;  %s499_s8 = scalar_select %p498_p6, %s8365_s27, 1 }
  0xac   : > { %v1169_v27 = vand.u32 4294901760, %v1151_v15  ;;  %v515_v28 = vsel %vm513_vm1, %v501_v16, 0  ;;  %7700 = vmatpush3.bf16.msra.mxu1 %v8607_v21  ;;  %7665 = vmatprep.subr.bf16.mxu0 %v8267_v0  ;;  %v599_v30 = vand.u32 4294901760, %v8601_v18  ;;  %v606_v31 = vand.u32 4294901760, %v8603_v19  ;;  %v1793_v16 = vld [vmem:[#allocation8 + $0x18] sm:$0xff]  ;;  %s9303_s16 = sld [smem:[#allocation19_spill]] }
  0xad   : > { %v8621_v29 = vand.u32 4294901760, %v515_v28  ;;  %v1241_v32 = vand.u32 4294901760, %v8605_v20  ;;  %7701 = vmatprep.subr.bf16.mxu1 %v8267_v0  ;;  %v8629_v34 = vsub.f32 %v1150_v14, %v1166_v26  ;;  %v1248_v36 = vand.u32 4294901760, %v8609_v22  ;;  %s500_s20 = scalar_lea.vmem %s9274_s11, %s499_s8  ;;  %s9302_s8 = sld [smem:[#allocation18_spill]] }
  0xae   : > { %v8627_v33 = vpack.c.bf16 %v1169_v27, %v1166_v26  ;;  %v8631_v35 = vsub.f32 %v1151_v15, %v1169_v27  ;;  %v600_v38 = vsub.f32 %v8601_v18, %v599_v30  ;;  %v607_v39 = vsub.f32 %v8603_v19, %v606_v31  ;;  %s9304_s17 = sld [smem:[#allocation20_spill]]  ;;  %p9306_p7 = scmp.ne.s32.totalorder %s9293_s10, 0 }
  0xaf   : > { %v8635_v37 = vsub.f32 %v515_v28, %v8621_v29  ;;  %v1242_v40 = vsub.f32 %v8605_v20, %v1241_v32  ;;  %7667 = vmatpush3.bf16.msra.mxu0 %v8611_v23  ;;  %v1249_v41 = vsub.f32 %v8609_v22, %v1248_v36  ;;  %v613_v42 = vand.u32 4294901760, %v8613_v24 }
  0xb0   : > { %v620_v43 = vand.u32 4294901760, %v8616_v25  ;;  %v1255_v44 = vand.u32 4294901760, %v8629_v34  ;;  %7703 = vmatpush3.bf16.msra.mxu1 %v8627_v33  ;;  %7668 = vmatprep.subr.bf16.mxu0 %v8267_v0  ;;  %v601_v46 = vand.u32 4294901760, %v600_v38  ;;  %v608_v47 = vand.u32 4294901760, %v607_v39 }
  0xb1   : > { %v8655_v45 = vand.u32 4294901760, %v8635_v37  ;;  %v1243_v48 = vand.u32 4294901760, %v1242_v40  ;;  %7704 = vmatprep.subr.bf16.mxu1 %v8267_v0  ;;  %v1250_v49 = vand.u32 4294901760, %v1249_v41  ;;  %v614_v50 = vsub.f32 %v8613_v24, %v613_v42 }
  0xb2   : > { %v621_v51 = vsub.f32 %v8616_v25, %v620_v43  ;;  %v1256_v52 = vsub.f32 %v8629_v34, %v1255_v44  ;;  %v1262_v54 = vand.u32 4294901760, %v8631_v35  ;;  %v7669_v55 = vpack.c.bf16 %v608_v47, %v601_v46 }
  0xb3   : > { %v589_v53 = vsub.f32 %v8635_v37, %v8655_v45  ;;  %v7705_v56 = vpack.c.bf16 %v1250_v49, %v1243_v48  ;;  %v615_v57 = vand.u32 4294901760, %v614_v50  ;;  %v7675_v3 = vpack.c.bf16 %v8603_v19, %v8601_v18 }
  0xb4   : > { %v622_v58 = vand.u32 4294901760, %v621_v51  ;;  %v1257_v60 = vand.u32 4294901760, %v1256_v52  ;;  %v1263_v61 = vsub.f32 %v8631_v35, %v1262_v54  ;;  %v7711_v4 = vpack.c.bf16 %v8609_v22, %v8605_v20 }
  0xb5   : > { %v8671_v59 = vand.u32 4294901760, %v589_v53  ;;  %v7678_v5 = vpack.c.bf16 %v8616_v25, %v8613_v24  ;;  %v7714_v6 = vpack.c.bf16 %v8631_v35, %v8629_v34  ;;  %v7687_v7 = vpack.c.bf16 %v606_v31, %v599_v30 }
  0xb6   : > { %v1264_v62 = vand.u32 4294901760, %v1263_v61  ;;  %v7672_v63 = vpack.c.bf16 %v622_v58, %v615_v57  ;;  %v7723_v8 = vpack.c.bf16 %v1248_v36, %v1241_v32  ;;  %v7690_v9 = vpack.c.bf16 %v620_v43, %v613_v42 }
  0xb7   : > { %7167 = vmatmul.mubr.f32.vlgmr.msra.gmra.mrb[0].mxu0 %v8671_v59  ;;  %7233 = vmatmul.mubr.f32.vlgmr.msra.gmra.mrb[0].mxu1 %v8671_v59  ;;  %v7726_v10 = vpack.c.bf16 %v1262_v54, %v1255_v44  ;;  %v1802_v14 = vand.u32 4294901760, %v1790_v11  ;;  %v1805_v15 = vand.u32 4294901760, %v1791_v12  ;;  %v1811_v18 = vand.u32 4294901760, %v1793_v16 }
  0xb8   : > { %7670 = vmatpush3.bf16.msra.mxu0 %v7669_v55  ;;  %7706 = vmatpush3.bf16.msra.mxu1 %v7705_v56  ;;  %v7708_v2 = vpack.c.bf16 %v1264_v62, %v1257_v60  ;;  %v8273_v52 = vmov 1983009808   ;;  %v1017_v54 = vlaneseq  ;;  %v8274_v55 = vmov 1934713408  }
  0xb9   : > { %7671 = vmatprep.subr.bf16.mxu0 %v8267_v0  ;;  %7707 = vmatprep.subr.bf16.mxu1 %v8267_v0  ;;  %v8760_v19 = vpack.c.bf16 %v1805_v15, %v1802_v14  ;;  %v1882_v20 = vsub.f32 %v1790_v11, %v1802_v14  ;;  %v1015_v53 = vunpack.c.l.s4 %v8273_v52  ;;  %v1047_v56 = vunpack.c.l.s4 %v8274_v55 }
  0xba   : > { %7177 = vmatprep.mubr.msk.f32.mxu0 %vm8268_vm0, %v8269_v1  ;;  %7243 = vmatprep.mubr.msk.f32.mxu1 %vm8268_vm0, %v8269_v1  ;;  %v1018_v58 = vshrl.u32 %v1017_v54, 7  ;;  %vm2439_vm2 = vcmask 64512   ;;  %vm6241_vm3 = vcmask 130048   ;;  %vm6243_vm4 = vcmask 195584  }
  0xbb   : > { %v1883_v25 = vand.u32 4294901760, %v1882_v20  ;;  %v1016_v57 = vunpack.c.0.s8 %v1015_v53  ;;  %v1048_v61 = vunpack.c.0.s8 %v1047_v56 }
  0xbc   : > { %7673 = vmatpush3.bf16.msra.mxu0 %v7672_v63  ;;  %7709 = vmatpush3.bf16.msra.mxu1 %v7708_v2 }
  0xbd   : > { %7674 = vmatprep.subr.bf16.mxu0 %v8267_v0  ;;  %7710 = vmatprep.subr.bf16.mxu1 %v8267_v0  ;;  %v1884_v30 = vsub.f32 %v1882_v20, %v1883_v25  ;;  %v8812_v62 = vsub.s32 %v1016_v57, %v1018_v58 }
  0xbf   : > { %7178 = vmatmul.mubr.f32.vlgmr.msra.gmra.mrb[0].mxu0 %v8621_v29  ;;  %7244 = vmatmul.mubr.f32.vlgmr.msra.gmra.mrb[0].mxu1 %v8621_v29  ;;  %v1885_v34 = vand.u32 4294901760, %v1884_v30 }
  0xc0   : > { %7676 = vmatpush3.bf16.msra.mxu0 %v7675_v3  ;;  %7712 = vmatpush3.bf16.msra.mxu1 %v7711_v4 }
  0xc1   : > { %7677 = vmatprep.subr.bf16.mxu0 %v8267_v0  ;;  %7713 = vmatprep.subr.bf16.mxu1 %v8267_v0 }
  0xc2   : > { %7188 = vmatprep.mubr.msk.f32.mxu0 %vm8268_vm0, %v8269_v1  ;;  %7254 = vmatprep.mubr.msk.f32.mxu1 %vm8268_vm0, %v8269_v1 }
  0xc4   : > { %7679 = vmatpush3.bf16.msra.mxu0 %v7678_v5  ;;  %7715 = vmatpush3.bf16.msra.mxu1 %v7714_v6  ;;  %v8814_v6 = vsub.s32 %v1048_v61, %v1018_v58 }
  0xc5   : > { %7680 = vmatprep.subr.bf16.mxu0 %v8267_v0  ;;  %7716 = vmatprep.subr.bf16.mxu1 %v8267_v0 }
  0xc7   : > { %7189 = vmatmul.mubr.f32.vlgmr.msra.gmra.mrb[0].mxu0 %v8635_v37  ;;  %7255 = vmatmul.mubr.f32.vlgmr.msra.gmra.mrb[0].mxu1 %v8635_v37 }
  0xc8   : > { %7682 = vmatpush3.bf16.msra.mxu0 %v8599_v17  ;;  %7718 = vmatpush3.bf16.msra.mxu1 %v8607_v21 }
  0xc9   : > { %7683 = vmatprep.subr.bf16.mxu0 %v8267_v0  ;;  %7719 = vmatprep.subr.bf16.mxu1 %v8267_v0 }
  0xca   : > { %7199 = vmatprep.mubr.msk.f32.mxu0 %vm8268_vm0, %v8269_v1  ;;  %7265 = vmatprep.mubr.msk.f32.mxu1 %vm8268_vm0, %v8269_v1 }
  0xcc   : > { %7685 = vmatpush3.bf16.msra.mxu0 %v8611_v23  ;;  %7721 = vmatpush3.bf16.msra.mxu1 %v8627_v33 }
  0xcd   : > { %7686 = vmatprep.subr.bf16.mxu0 %v8267_v0  ;;  %7722 = vmatprep.subr.bf16.mxu1 %v8267_v0 }
  0xcf   : > { %7200 = vmatmul.mubr.f32.vlgmr.msra.gmra.mrb[0].mxu0 %v8655_v45  ;;  %7266 = vmatmul.mubr.f32.vlgmr.msra.gmra.mrb[0].mxu1 %v8655_v45 }
  0xd0   : > { %7688 = vmatpush3.bf16.msra.mxu0 %v7687_v7  ;;  %7724 = vmatpush3.bf16.msra.mxu1 %v7723_v8 }
  0xd1   : > { %7689 = vmatprep.subr.bf16.mxu0 %v8267_v0  ;;  %7725 = vmatprep.subr.bf16.mxu1 %v8267_v0 }
  0xd2   : > { %7210 = vmatprep.mubr.msk.f32.mxu0 %vm8268_vm0, %v8269_v1  ;;  %7276 = vmatprep.mubr.msk.f32.mxu1 %vm8268_vm0, %v8269_v1 }
  0xd4   : > { %7691 = vmatpush3.bf16.msra.mxu0 %v7690_v9  ;;  %7727 = vmatpush3.bf16.msra.mxu1 %v7726_v10 }
  0xd5   : > { %7692 = vmatprep.subr.bf16.mxu0 %v8267_v0  ;;  %7728 = vmatprep.subr.bf16.mxu1 %v8267_v0 }
  0xd7   : > { %7211 = vmatmul.mubr.f32.vlgmr.msra.gmra.mrb[0].mxu0 %v8621_v29  ;;  %7277 = vmatmul.mubr.f32.vlgmr.msra.gmra.mrb[0].mxu1 %v8621_v29 }
  0xd8   : > { %7694 = vmatpush3.bf16.msra.mxu0 %v8599_v17  ;;  %7730 = vmatpush3.bf16.msra.mxu1 %v8607_v21  ;;  %v1808_v17 = vand.u32 4294901760, %v1792_v13  ;;  %v1889_v21 = vsub.f32 %v1791_v12, %v1805_v15 }
  0xd9   : > { %7695 = vmatprep.subr.bf16.mxu0 %v8267_v0  ;;  %7731 = vmatprep.subr.bf16.mxu1 %v8267_v0 }
  0xda   : > { %7221 = vmatprep.mubr.msk.f32.mxu0 %vm8268_vm0, %v8269_v1  ;;  %7287 = vmatprep.mubr.msk.f32.mxu1 %vm8268_vm0, %v8269_v1  ;;  %v1896_v22 = vsub.f32 %v1792_v13, %v1808_v17  ;;  %v8763_v24 = vpack.c.bf16 %v1811_v18, %v1808_v17  ;;  %v1890_v26 = vand.u32 4294901760, %v1889_v21  ;;  %v7747_v41 = vpack.c.bf16 %v1889_v21, %v1882_v20 }
  0xdc   : > { %7697 = vmatpush3.bf16.msra.mxu0 %v8611_v23  ;;  %7733 = vmatpush3.bf16.msra.mxu1 %v8627_v33  ;;  %v1903_v23 = vsub.f32 %v1793_v16, %v1811_v18  ;;  %v1897_v27 = vand.u32 4294901760, %v1896_v22  ;;  %v1891_v31 = vsub.f32 %v1889_v21, %v1890_v26  ;;  %v7759_v43 = vpack.c.bf16 %v1890_v26, %v1883_v25 }
  0xdd   : > { %7734 = vmatprep.subr.bf16.mxu0 %v8267_v0  ;;  %7356 = vmatprep.subr.mxu1 %v8269_v1 }
  0xde   : > { %v1904_v28 = vand.u32 4294901760, %v1903_v23  ;;  %v1898_v32 = vsub.f32 %v1896_v22, %v1897_v27  ;;  %v1892_v35 = vand.u32 4294901760, %v1891_v31  ;;  %v7750_v42 = vpack.c.bf16 %v1903_v23, %v1896_v22 }
  0xdf   : > { %7222 = vmatmul.mubr.f32.vlgmr.msra.gmra.mrb[0].mxu0 %v8621_v29  ;;  %7288 = vmatmul.mubr.f32.vlgmr.msra.gmra.mrb[0].mxu1 %v8621_v29 }
  0xe0   : > { %7298 = vmatprep.mubr.msk.f32.mxu0 %vm8268_vm0, %v8269_v1  ;;  %7358 = vmatprep.mubr.msk.f32.mxu1 %vm8268_vm0, %v8269_v1  ;;  %v1905_v33 = vsub.f32 %v1903_v23, %v1904_v28  ;;  %v1899_v36 = vand.u32 4294901760, %v1898_v32  ;;  %v7741_v39 = vpack.c.bf16 %v1892_v35, %v1885_v34  ;;  %v7762_v50 = vpack.c.bf16 %v1904_v28, %v1897_v27 }
  0xe1   : > { %7736 = vmatpush3.bf16.msra.mxu0 %v8760_v19 }
  0xe2   : > { %7737 = vmatprep.subr.bf16.mxu0 %v8267_v0  ;;  %v1906_v38 = vand.u32 4294901760, %v1905_v33 }
  0xe4   : > { %v7744_v40 = vpack.c.bf16 %v1906_v38, %v1899_v36 }
  0xe5   : > { %7739 = vmatpush3.bf16.msra.mxu0 %v8763_v24 }
  0xe6   : > { %7740 = vmatprep.subr.bf16.mxu0 %v8267_v0 }
  0xe8   : > { %7299 = vmatmul.mubr.f32.vlgmr.msra.gmra.mrb[2].mxu0 %v8671_v59 }
  0xe9   : > { %7742 = vmatpush3.bf16.msra.mxu0 %v7741_v39  ;;  %7309 = vmatprep.mubr.msk.f32.mxu0 %vm8268_vm0, %v8269_v1 }
  0xea   : > { %7743 = vmatprep.subr.bf16.mxu0 %v8267_v0 }
  0xed   : > { %7745 = vmatpush3.bf16.msra.mxu0 %v7744_v40 }
  0xee   : > { %7746 = vmatprep.subr.bf16.mxu0 %v8267_v0 }
  0xf0   : > { %7310 = vmatmul.mubr.f32.vlgmr.msra.gmra.mrb[2].mxu0 %v8621_v29 }
  0xf1   : > { %7748 = vmatpush3.bf16.msra.mxu0 %v7747_v41  ;;  %7320 = vmatprep.mubr.msk.f32.mxu0 %vm8268_vm0, %v8269_v1 }
  0xf2   : > { %7749 = vmatprep.subr.bf16.mxu0 %v8267_v0 }
  0xf5   : > { %7751 = vmatpush3.bf16.msra.mxu0 %v7750_v42 }
  0xf6   : > { %7752 = vmatprep.subr.bf16.mxu0 %v8267_v0 }
  0xf8   : > { %7321 = vmatmul.mubr.f32.vlgmr.msra.gmra.mrb[2].mxu0 %v8635_v37  ;;  %v6923_v37 = vld [vmem:[%s9268_s5] ss:$0 sm:$0xff] }
  0xf9   : > { %7754 = vmatpush3.bf16.msra.mxu0 %v8760_v19  ;;  %7331 = vmatprep.mubr.msk.f32.mxu0 %vm8268_vm0, %v8269_v1 }
  0xfa   : > { %7755 = vmatprep.subr.bf16.mxu0 %v8267_v0 }
  0xfd   : > { %7757 = vmatpush3.bf16.msra.mxu0 %v8763_v24 }
  0xfe   : > { %7758 = vmatprep.subr.bf16.mxu0 %v8267_v0 }
 0x100   : > { %7332 = vmatmul.mubr.f32.vlgmr.msra.gmra.mrb[2].mxu0 %v8655_v45  ;;  %v6926_v45 = vld [vmem:[%s9269_s6] ss:$0 sm:$0xff] }
 0x101   : > { %7342 = vmatprep.mubr.msk.f32.mxu0 %vm8268_vm0, %v8269_v1  ;;  %7760 = vmatpush3.bf16.msra.mxu0 %v7759_v43 }
 0x102   : > { %7761 = vmatprep.subr.bf16.mxu0 %v8267_v0 }
 0x105   : > { %7763 = vmatpush3.bf16.msra.mxu0 %v7762_v50 }
 0x106   : > { %7764 = vmatprep.subr.bf16.mxu0 %v8267_v0 }
 0x108   : > { %7343 = vmatmul.mubr.f32.vlgmr.msra.gmra.mrb[2].mxu0 %v8621_v29 }
 0x109   : > { %7766 = vmatpush3.bf16.msra.mxu0 %v8760_v19  ;;  %7353 = vmatprep.mubr.msk.f32.mxu0 %vm8268_vm0, %v8269_v1 }
 0x10a   : > { %7767 = vmatprep.subr.bf16.mxu0 %v8267_v0 }
 0x10d   : > { %7769 = vmatpush3.bf16.msra.mxu0 %v8763_v24 }
 0x10e   : > { %7416 = vmatprep.subr.mxu0 %v8269_v1 }
 0x110   : > { %7354 = vmatmul.mubr.f32.vlgmr.msra.gmra.mrb[2].mxu0 %v8621_v29 }
 0x111   : > { %7418 = vmatprep.mubr.msk.f32.mxu0 %vm8268_vm0, %v8269_v1 }
 0x1b2   : > { %v998_v44 = vpop.f32.mrb[0].mxu0  ;;  %v1640_v46 = vpop.f32.mrb[0].mxu1 }
 0x1b3   : > { %v7806_v47 = vadd.f32 %v6923_v37, %v998_v44  ;;  %v7223_v48 = vpop.f32.mrb[1].mxu0  ;;  %v7289_v49 = vpop.f32.mrb[1].mxu1  ;;  %v7807_v51 = vadd.f32 %v6926_v45, %v1640_v46 }
 0x1b5   : > { %1009 = vrot.lane.b32.xlu1 %v7806_v47, %s8270_s9  ;;  %1003 = vrot.lane.b32.xlu0 %v7806_v47, %s8271_s12 }
 0x1b9   : > { %1645 = vrot.lane.b32.xlu1 %v7807_v51, %s8271_s12  ;;  %1006 = vrot.lane.b32.xlu0 %v7806_v47, %s8272_s18 }
 0x1bd   : > { %1651 = vrot.lane.b32.xlu1 %v7807_v51, %s8270_s9  ;;  %1648 = vrot.lane.b32.xlu0 %v7807_v51, %s8272_s18 }
 0x227   : > { %v1010_v59 = vpop.permute.xlu1 %1009  ;;  %v1004_v60 = vpop.permute.xlu0 %1003 }
 0x228   : > { %v1028_v63 = vcombine.low %v1004_v60, %v1010_v59  ;;  %v1029_v2 = vcombine.high %v1004_v60, %v1010_v59 }
 0x22a   : > { %v1036_v7 = vrot.slane %v1028_v63, %v8812_v62  ;;  %v1043_v8 = vrot.slane %v1029_v2, %v8812_v62 }
 0x22b   : > { %v1646_v3 = vpop.permute.xlu1 %1645  ;;  %v1007_v4 = vpop.permute.xlu0 %1006 }
 0x22c   : > { %v1012_v29 = vcombine.low %v7806_v47, %v1007_v4  ;;  %v1013_v5 = vcombine.high %v7806_v47, %v1007_v4 }
 0x22e   : > { %v1020_v9 = vrot.slane %v1012_v29, %v8812_v62  ;;  %v1027_v10 = vrot.slane %v1013_v5, %v8812_v62 }
 0x22f   : > { %v1652_v11 = vpop.permute.xlu1 %1651  ;;  %v1649_v12 = vpop.permute.xlu0 %1648 }
 0x230   : > { %v1044_v13 = vcombine.low %v1020_v9, %v1036_v7  ;;  %v1045_v14 = vcombine.high %v1020_v9, %v1036_v7  ;;  %v1060_v15 = vcombine.low %v1027_v10, %v1043_v8  ;;  %v1061_v16 = vcombine.high %v1027_v10, %v1043_v8 }
 0x231   : > { %v1670_v17 = vcombine.low %v1646_v3, %v1652_v11  ;;  %v1671_v18 = vcombine.high %v1646_v3, %v1652_v11  ;;  %v1654_v19 = vcombine.low %v7807_v51, %v1649_v12  ;;  %v1655_v20 = vcombine.high %v7807_v51, %v1649_v12 }
 0x232   : > { %v1052_v21 = vrot.slane %v1044_v13, %v8814_v6  ;;  %v1059_v22 = vrot.slane %v1045_v14, %v8814_v6  ;;  %v1068_v23 = vrot.slane %v1060_v15, %v8814_v6  ;;  %v1075_v24 = vrot.slane %v1061_v16, %v8814_v6 }
 0x233   : > { %v1678_v25 = vrot.slane %v1670_v17, %v8812_v62  ;;  %v1685_v26 = vrot.slane %v1671_v18, %v8812_v62  ;;  %v1662_v27 = vrot.slane %v1654_v19, %v8812_v62  ;;  %v1669_v28 = vrot.slane %v1655_v20, %v8812_v62 }
 0x234   : > { %v1080_v30 = vcombine.low %v1052_v21, %v1059_v22  ;;  %v6924_v31 = vcombine.high %v1052_v21, %v1059_v22  ;;  %v1096_v32 = vcombine.low %v1068_v23, %v1075_v24  ;;  %v6925_v33 = vcombine.high %v1068_v23, %v1075_v24 }
 0x235   : > { %v1686_v34 = vcombine.low %v1662_v27, %v1678_v25  ;;  %v1687_v35 = vcombine.high %v1662_v27, %v1678_v25  ;;  %v1702_v36 = vcombine.low %v1669_v28, %v1685_v26  ;;  %v1703_v38 = vcombine.high %v1669_v28, %v1685_v26 }
 0x236   : > { %v1087_v39 = vrot.slane %v1080_v30, %v8812_v62  ;;  %v1095_v40 = vrot.slane %v6924_v31, %v8812_v62  ;;  %v1103_v41 = vrot.slane %v1096_v32, %v8812_v62  ;;  %v1111_v42 = vrot.slane %v6925_v33, %v8812_v62 }
 0x237   : > { %v1694_v43 = vrot.slane %v1686_v34, %v8814_v6  ;;  %v1701_v37 = vrot.slane %v1687_v35, %v8814_v6  ;;  %v1710_v44 = vrot.slane %v1702_v36, %v8814_v6  ;;  %v1717_v46 = vrot.slane %v1703_v38, %v8814_v6 }
 0x238   : > { %v1112_v47 = vcombine.low %v1087_v39, %v1095_v40  ;;  %v1113_v48 = vcombine.high %v1087_v39, %v1095_v40  ;;  %v1128_v49 = vcombine.low %v1103_v41, %v1111_v42  ;;  %v1129_v50 = vcombine.high %v1103_v41, %v1111_v42 }
 0x239   : > { %v1722_v45 = vcombine.low %v1694_v43, %v1701_v37  ;;  %v6927_v51 = vcombine.high %v1694_v43, %v1701_v37  ;;  %v1738_v52 = vcombine.low %v1710_v44, %v1717_v46  ;;  %v6928_v53 = vcombine.high %v1710_v44, %v1717_v46 }
 0x23a   : > { %v8837_v54 = vrot.slane %v1112_v47, %v8814_v6  ;;  %v8840_v55 = vrot.slane %v1113_v48, %v8814_v6  ;;  %v8843_v56 = vrot.slane %v1128_v49, %v8814_v6  ;;  %v8846_v57 = vrot.slane %v1129_v50, %v8814_v6 }
 0x23b   : > { %v1729_v58 = vrot.slane %v1722_v45, %v8812_v62  ;;  %v1737_v59 = vrot.slane %v6927_v51, %v8812_v62  ;;  %v1745_v60 = vrot.slane %v1738_v52, %v8812_v62  ;;  %v1753_v61 = vrot.slane %v6928_v53, %v8812_v62 }
 0x23c   : > { %v1144_v63 = vcombine.low %v8837_v54, %v8843_v56  ;;  %v1146_v2 = vcombine.low %v8840_v55, %v8846_v57  ;;  %v1147_v3 = vcombine.high %v8840_v55, %v8846_v57  ;;  %v1145_v41 = vcombine.high %v8837_v54, %v8843_v56 }
 0x23d   : > { %v1754_v4 = vcombine.low %v1729_v58, %v1737_v59  ;;  %v1755_v29 = vcombine.high %v1729_v58, %v1737_v59  ;;  %v1770_v5 = vcombine.low %v1745_v60, %v1753_v61  ;;  %v1771_v7 = vcombine.high %v1745_v60, %v1753_v61 }
 0x23e   : > { %v2441_v8 = vsel %vm2439_vm2, %v1144_v63, 0  ;;  %v3345_v9 = vsel %vm2439_vm2, %v1146_v2, 0  ;;  %v2893_v43 = vsel %vm2439_vm2, %v1145_v41, 0  ;;  %v3797_v54 = vsel %vm2439_vm2, %v1147_v3, 0  ;;  %v2282_v63 = vpop.f32.mrb[2].mxu0 }
 0x23f   : > { %v1762_v10 = vrot.slane %v1754_v4, %v8814_v6  ;;  %v1778_v11 = vrot.slane %v1770_v5, %v8814_v6  ;;  %v8863_v12 = vrot.slane %v1755_v29, %v8814_v6  ;;  %v8866_v13 = vrot.slane %v1771_v7, %v8814_v6  ;;  %v7355_v55 = vpop.f32.mrb[3].mxu0  ;;  %v6932_v7 = vld [vmem:[%s500_s20] ss:$0 sm:$0xff] }
 0x240   : > { %v8868_v14 = vand.u32 4294901760, %v2441_v8  ;;  %v8870_v15 = vand.u32 4294901760, %v3345_v9  ;;  %v2964_v44 = vand.u32 4294901760, %v2893_v43  ;;  %v3868_v58 = vand.u32 4294901760, %v3797_v54 }
 0x241   : > { %v1786_v16 = vcombine.low %v1762_v10, %v1778_v11  ;;  %v1788_v17 = vcombine.low %v8863_v12, %v8866_v13  ;;  %v1789_v18 = vcombine.high %v8863_v12, %v8866_v13  ;;  %v1787_v42 = vcombine.high %v1762_v10, %v1778_v11 }
 0x242   : > { %v2513_v19 = vsub.f32 %v2441_v8, %v8868_v14  ;;  %v3417_v20 = vsub.f32 %v3345_v9, %v8870_v15  ;;  %v2965_v47 = vsub.f32 %v2893_v43, %v2964_v44  ;;  %v3869_v60 = vsub.f32 %v3797_v54, %v3868_v58 }
 0x243   : > { %v2444_v21 = vsel %vm2439_vm2, %v1786_v16, 0  ;;  %v3348_v22 = vsel %vm2439_vm2, %v1788_v17, 0  ;;  %v2896_v37 = vsel %vm2439_vm2, %v1787_v42, 0  ;;  %v3800_v56 = vsel %vm2439_vm2, %v1789_v18, 0 }
 0x244   : > { %v2447_v23 = vand.u32 4294901760, %v2444_v21  ;;  %v3351_v24 = vand.u32 4294901760, %v3348_v22  ;;  %v2514_v25 = vand.u32 4294901760, %v2513_v19  ;;  %v3418_v26 = vand.u32 4294901760, %v3417_v20 }
 0x245   : > { %v2899_v46 = vand.u32 4294901760, %v2896_v37  ;;  %v2966_v49 = vand.u32 4294901760, %v2965_v47  ;;  %v3803_v59 = vand.u32 4294901760, %v3800_v56  ;;  %v3870_v57 = vand.u32 4294901760, %v3869_v60 }
 0x246   : > { %7357 = vmatpush3.xpose.msra.mxu1 %v2447_v23  ;;  %v2524_v27 = vsub.f32 %v2444_v21, %v2447_v23  ;;  %7417 = vmatpush3.xpose.msra.mxu0 %v3351_v24  ;;  %v3428_v28 = vsub.f32 %v3348_v22, %v3351_v24  ;;  %v2515_v30 = vsub.f32 %v2513_v19, %v2514_v25 }
 0x247   : > { %v3419_v31 = vsub.f32 %v3417_v20, %v3418_v26  ;;  %7361 = vmatprep.subr.mxu1 %v8269_v1  ;;  %7421 = vmatprep.subr.mxu0 %v8269_v1  ;;  %v2976_v48 = vsub.f32 %v2896_v37, %v2899_v46  ;;  %v2967_v45 = vsub.f32 %v2965_v47, %v2966_v49 }
 0x248   : > { %v2516_v32 = vand.u32 4294901760, %v2515_v30  ;;  %v2525_v33 = vand.u32 4294901760, %v2524_v27  ;;  %v3429_v34 = vand.u32 4294901760, %v3428_v28  ;;  %v3880_v61 = vsub.f32 %v3800_v56, %v3803_v59 }
 0x249   : > { %v3420_v35 = vand.u32 4294901760, %v3419_v31  ;;  %v2977_v50 = vand.u32 4294901760, %v2976_v48  ;;  %v2968_v52 = vand.u32 4294901760, %v2967_v45  ;;  %v3871_v3 = vsub.f32 %v3869_v60, %v3870_v57 }
 0x24a   : > { %7359 = vmatmul.mubr.f32.vlgmr.msra.gmra.mrb[2].mxu1 %v2516_v32  ;;  %v2526_v36 = vsub.f32 %v2524_v27, %v2525_v33  ;;  %v3430_v38 = vsub.f32 %v3428_v28, %v3429_v34  ;;  %v3881_v2 = vand.u32 4294901760, %v3880_v61 }
 0x24b   : > { %7419 = vmatmul.mubr.f32.vlgmr.msra.gmra.mrb[4].mxu0 %v3420_v35  ;;  %7363 = vmatprep.mubr.msk.f32.mxu1 %vm8268_vm0, %v8269_v1  ;;  %v2978_v51 = vsub.f32 %v2976_v48, %v2977_v50  ;;  %v3872_v29 = vand.u32 4294901760, %v3871_v3 }
 0x24c   : > { %v2527_v39 = vand.u32 4294901760, %v2526_v36  ;;  %v3431_v40 = vand.u32 4294901760, %v3430_v38  ;;  %7423 = vmatprep.mubr.msk.f32.mxu0 %vm8268_vm0, %v8269_v1  ;;  %v3882_v4 = vsub.f32 %v3880_v61, %v3881_v2 }
 0x24d   : > { %v2979_v53 = vand.u32 4294901760, %v2978_v51 }
 0x24e   : > { %7362 = vmatpush3.xpose.msra.mxu1 %v2527_v39  ;;  %7422 = vmatpush3.xpose.msra.mxu0 %v3431_v40  ;;  %v3883_v5 = vand.u32 4294901760, %v3882_v4 }
 0x24f   : > { %7366 = vmatprep.subr.mxu1 %v8269_v1  ;;  %7426 = vmatprep.subr.mxu0 %v8269_v1 }
 0x252   : > { %7364 = vmatmul.mubr.f32.vlgmr.msra.gmra.mrb[2].mxu1 %v8868_v14 }
 0x253   : > { %7367 = vmatpush3.xpose.msra.mxu1 %v2524_v27  ;;  %7424 = vmatmul.mubr.f32.vlgmr.msra.gmra.mrb[4].mxu0 %v8870_v15 }
 0x254   : > { %7427 = vmatpush3.xpose.msra.mxu0 %v3428_v28  ;;  %7368 = vmatprep.mubr.msk.f32.mxu1 %vm8268_vm0, %v8269_v1 }
 0x255   : > { %7371 = vmatprep.subr.mxu1 %v8269_v1  ;;  %7428 = vmatprep.mubr.msk.f32.mxu0 %vm8268_vm0, %v8269_v1 }
 0x256   : > { %7431 = vmatprep.subr.mxu0 %v8269_v1 }
 0x25a   : > { %7369 = vmatmul.mubr.f32.vlgmr.msra.gmra.mrb[2].mxu1 %v2513_v19 }
 0x25b   : > { %7372 = vmatpush3.xpose.msra.mxu1 %v2447_v23  ;;  %7429 = vmatmul.mubr.f32.vlgmr.msra.gmra.mrb[4].mxu0 %v3417_v20  ;;  %v6929_v20 = vld [vmem:[%s9270_s7] ss:$0 sm:$0xff] }
 0x25c   : > { %7432 = vmatpush3.xpose.msra.mxu0 %v3351_v24  ;;  %7373 = vmatprep.mubr.msk.f32.mxu1 %vm8268_vm0, %v8269_v1  ;;  %v7808_v21 = vadd.f32 %v6929_v20, %v2282_v63 }
 0x25d   : > { %7376 = vmatprep.subr.mxu1 %v8269_v1  ;;  %7433 = vmatprep.mubr.msk.f32.mxu0 %vm8268_vm0, %v8269_v1 }
 0x25e   : > { %7436 = vmatprep.subr.mxu0 %v8269_v1 }
 0x262   : > { %7374 = vmatmul.mubr.f32.vlgmr.msra.gmra.mrb[2].mxu1 %v2514_v25 }
 0x263   : > { %7377 = vmatpush3.xpose.msra.mxu1 %v2525_v33  ;;  %7434 = vmatmul.mubr.f32.vlgmr.msra.gmra.mrb[4].mxu0 %v3418_v26 }
 0x264   : > { %7437 = vmatpush3.xpose.msra.mxu0 %v3429_v34  ;;  %7378 = vmatprep.mubr.msk.f32.mxu1 %vm8268_vm0, %v8269_v1 }
 0x265   : > { %7381 = vmatprep.subr.mxu1 %v8269_v1  ;;  %7438 = vmatprep.mubr.msk.f32.mxu0 %vm8268_vm0, %v8269_v1 }
 0x266   : > { %7441 = vmatprep.subr.mxu0 %v8269_v1 }
 0x26a   : > { %7379 = vmatmul.mubr.f32.vlgmr.msra.gmra.mrb[2].mxu1 %v8868_v14 }
 0x26b   : > { %7382 = vmatpush3.xpose.msra.mxu1 %v2447_v23  ;;  %7439 = vmatmul.mubr.f32.vlgmr.msra.gmra.mrb[4].mxu0 %v8870_v15 }
 0x26c   : > { %7442 = vmatpush3.xpose.msra.mxu0 %v3351_v24  ;;  %7383 = vmatprep.mubr.msk.f32.mxu1 %vm8268_vm0, %v8269_v1 }
 0x26d   : > { %7386 = vmatprep.subr.mxu1 %v8269_v1  ;;  %7443 = vmatprep.mubr.msk.f32.mxu0 %vm8268_vm0, %v8269_v1 }
 0x26e   : > { %7476 = vmatprep.subr.mxu0 %v8269_v1 }
 0x272   : > { %7384 = vmatmul.mubr.f32.vlgmr.msra.gmra.mrb[2].mxu1 %v8868_v14 }
 0x273   : > { %7387 = vmatpush3.xpose.msra.mxu1 %v2899_v46  ;;  %7444 = vmatmul.mubr.f32.vlgmr.msra.gmra.mrb[4].mxu0 %v8870_v15 }
 0x274   : > { %7388 = vmatprep.mubr.msk.f32.mxu1 %vm8268_vm0, %v8269_v1  ;;  %7391 = vmatprep.subr.mxu1 %v8269_v1 }
 0x275   : > { %7478 = vmatprep.mubr.msk.f32.mxu0 %vm8268_vm0, %v8269_v1 }
 0x276   : > { %7389 = vmatmul.mubr.f32.vlgmr.msra.gmra.mrb[4].mxu1 %v2968_v52 }
 0x277   : > { %7392 = vmatpush3.xpose.msra.mxu1 %v2979_v53  ;;  %7393 = vmatprep.mubr.msk.f32.mxu1 %vm8268_vm0, %v8269_v1 }
 0x278   : > { %7396 = vmatprep.subr.mxu1 %v8269_v1 }
 0x27e   : > { %7394 = vmatmul.mubr.f32.vlgmr.msra.gmra.mrb[4].mxu1 %v2964_v44 }
 0x27f   : > { %7397 = vmatpush3.xpose.msra.mxu1 %v2976_v48  ;;  %7398 = vmatprep.mubr.msk.f32.mxu1 %vm8268_vm0, %v8269_v1 }
 0x280   : > { %7401 = vmatprep.subr.mxu1 %v8269_v1 }
 0x286   : > { %7399 = vmatmul.mubr.f32.vlgmr.msra.gmra.mrb[4].mxu1 %v2965_v47 }
 0x287   : > { %7402 = vmatpush3.xpose.msra.mxu1 %v2899_v46  ;;  %7403 = vmatprep.mubr.msk.f32.mxu1 %vm8268_vm0, %v8269_v1 }
 0x288   : > { %7406 = vmatprep.subr.mxu1 %v8269_v1 }
 0x28e   : > { %7404 = vmatmul.mubr.f32.vlgmr.msra.gmra.mrb[4].mxu1 %v2966_v49 }
 0x28f   : > { %7407 = vmatpush3.xpose.msra.mxu1 %v2977_v50  ;;  %7408 = vmatprep.mubr.msk.f32.mxu1 %vm8268_vm0, %v8269_v1 }
 0x290   : > { %7411 = vmatprep.subr.mxu1 %v8269_v1 }
 0x296   : > { %7409 = vmatmul.mubr.f32.vlgmr.msra.gmra.mrb[4].mxu1 %v2964_v44 }
 0x297   : > { %7412 = vmatpush3.xpose.msra.mxu1 %v2899_v46  ;;  %7413 = vmatprep.mubr.msk.f32.mxu1 %vm8268_vm0, %v8269_v1 }
 0x298   : > { %7446 = vmatprep.subr.mxu1 %v8269_v1 }
 0x29e   : > { %7414 = vmatmul.mubr.f32.vlgmr.msra.gmra.mrb[4].mxu1 %v2964_v44 }
 0x29f   : > { %7447 = vmatpush3.xpose.msra.mxu1 %v3803_v59  ;;  %7448 = vmatprep.mubr.msk.f32.mxu1 %vm8268_vm0, %v8269_v1 }
 0x2a0   : > { %7451 = vmatprep.subr.mxu1 %v8269_v1 }
 0x2a2   : > { %7449 = vmatmul.mubr.f32.vlgmr.msra.gmra.mrb[6].mxu1 %v3872_v29 }
 0x2a3   : > { %7452 = vmatpush3.xpose.msra.mxu1 %v3883_v5  ;;  %7453 = vmatprep.mubr.msk.f32.mxu1 %vm8268_vm0, %v8269_v1 }
 0x2a4   : > { %7456 = vmatprep.subr.mxu1 %v8269_v1 }
 0x2aa   : > { %7454 = vmatmul.mubr.f32.vlgmr.msra.gmra.mrb[6].mxu1 %v3868_v58 }
 0x2ab   : > { %7457 = vmatpush3.xpose.msra.mxu1 %v3880_v61  ;;  %7458 = vmatprep.mubr.msk.f32.mxu1 %vm8268_vm0, %v8269_v1 }
 0x2ac   : > { %7461 = vmatprep.subr.mxu1 %v8269_v1 }
 0x2b2   : > { %7459 = vmatmul.mubr.f32.vlgmr.msra.gmra.mrb[6].mxu1 %v3869_v60 }
 0x2b3   : > { %7462 = vmatpush3.xpose.msra.mxu1 %v3803_v59  ;;  %7463 = vmatprep.mubr.msk.f32.mxu1 %vm8268_vm0, %v8269_v1 }
 0x2b4   : > { %7466 = vmatprep.subr.mxu1 %v8269_v1 }
 0x2ba   : > { %7464 = vmatmul.mubr.f32.vlgmr.msra.gmra.mrb[6].mxu1 %v3870_v57 }
 0x2bb   : > { %7467 = vmatpush3.xpose.msra.mxu1 %v3881_v2  ;;  %7468 = vmatprep.mubr.msk.f32.mxu1 %vm8268_vm0, %v8269_v1 }
 0x2bc   : > { %7471 = vmatprep.subr.mxu1 %v8269_v1 }
 0x2c2   : > { %7469 = vmatmul.mubr.f32.vlgmr.msra.gmra.mrb[6].mxu1 %v3868_v58 }
 0x2c3   : > { %7472 = vmatpush3.xpose.msra.mxu1 %v3803_v59  ;;  %7473 = vmatprep.mubr.msk.f32.mxu1 %vm8268_vm0, %v8269_v1 }
 0x2c4   : > { %7506 = vmatprep.subr.mxu1 %v8269_v1 }
 0x2ca   : > { %7474 = vmatmul.mubr.f32.vlgmr.msra.gmra.mrb[6].mxu1 %v3868_v58 }
 0x2cb   : > { %7508 = vmatprep.mubr.msk.f32.mxu1 %vm8268_vm0, %v8269_v1 }
 0x345   : > { %v2888_v8 = vpop.f32.mrb[2].mxu1 }
 0x346   : > { %v7809_v9 = vadd.f32 %v6932_v7, %v2888_v8  ;;  %v3792_v10 = vpop.f32.mrb[4].mxu0  ;;  %v7385_v11 = vpop.f32.mrb[3].mxu1 }
 0x347   : > { %v7445_v12 = vpop.f32.mrb[5].mxu0  ;;  %v7811_v13 = vadd.f32 %v6932_v7, %v3792_v10 }
 0x348   : > { %v4248_v14 = vsel %vm2439_vm2, %v7809_v9, -inf }
 0x349   : > { %4249 = vmax.xlane.f32.xlu0 %v4248_v14  ;;  %v4254_v15 = vsel %vm2439_vm2, %v7811_v13, -inf }
 0x34d   : > { %4255 = vmax.xlane.f32.xlu0 %v4254_v15 }
 0x371   : > { %v3340_v16 = vpop.f32.mrb[4].mxu1 }
 0x372   : > { %v7810_v17 = vadd.f32 %v6932_v7, %v3340_v16  ;;  %v7415_v18 = vpop.f32.mrb[5].mxu1 }
 0x374   : > { %v4251_v19 = vsel %vm2439_vm2, %v7810_v17, -inf }
 0x375   : > { %4252 = vmax.xlane.f32.xlu1 %v4251_v19 }
 0x386   : > { %2287 = vrot.lane.b32.xlu1 %v7808_v21, %s8271_s12 }
 0x39d   : > { %v4244_v22 = vpop.f32.mrb[6].mxu1 }
 0x39e   : > { %v7812_v23 = vadd.f32 %v6932_v7, %v4244_v22  ;;  %v7475_v24 = vpop.f32.mrb[7].mxu1 }
 0x3a0   : > { %v4257_v25 = vsel %vm2439_vm2, %v7812_v23, -inf }
 0x3a1   : > { %4258 = vmax.xlane.f32.xlu0 %v4257_v25 }
 0x3d6   : > { %v4250_v26 = vpop.xlane.xlu0 %4249 }
 0x3d7   : > { %v4260_v27 = vsub.f32 %v7809_v9, %v4250_v26 }
 0x3d9   : > { %v4264_v28 = vmul.f32 1.442695, %v4260_v27 }
 0x3da   : > { %v4256_v33 = vpop.xlane.xlu0 %4255 }
 0x3db   : > { %8023 = vpow2.f32 %v4264_v28  ;;  %v4262_v36 = vsub.f32 %v7811_v13, %v4256_v33 }
 0x3dd   : > { %v4268_v38 = vmul.f32 1.442695, %v4262_v36 }
 0x3e5   : > { %v8024_v30 = vpop.eup %8023 }
 0x3e6   : > { %v4272_v31 = vsel %vm2439_vm2, %v8024_v30, 0.0 }
 0x3e7   : > { %4273 = vadd.xlane.f32.xlu1 %v4272_v31 }
 0x3f8   : > { %2293 = vrot.lane.b32.xlu1 %v7808_v21, %s8270_s9  ;;  %s8277_s9 = smov 24  }
 0x402   : > { %v4253_v32 = vpop.xlane.xlu1 %4252 }
 0x403   : > { %v4261_v34 = vsub.f32 %v7810_v17, %v4253_v32 }
 0x405   : > { %v4266_v35 = vmul.f32 1.442695, %v4261_v34 }
 0x406   : > { %v2288_v48 = vpop.permute.xlu1 %2287 }
 0x407   : > { %8025 = vpow2.f32 %v4266_v35 }
 0x408   : > { %8027 = vpow2.f32 %v4268_v38 }
 0x411   : > { %v8026_v39 = vpop.eup %8025 }
 0x412   : > { %v4275_v40 = vsel %vm2439_vm2, %v8026_v39, 0.0  ;;  %v8986_v41 = vpop.eup %8027 }
 0x413   : > { %4276 = vadd.xlane.f32.xlu0 %v4275_v40  ;;  %v4278_v42 = vsel %vm2439_vm2, %v8986_v41, 0.0 }
 0x41c   : > { %4279 = vadd.xlane.f32.xlu1 %v4278_v42 }
 0x429   : > { %2290 = vrot.lane.b32.xlu0 %v7808_v21, %s8272_s18 }
 0x42e   : > { %v4259_v43 = vpop.xlane.xlu0 %4258 }
 0x42f   : > { %v4263_v37 = vsub.f32 %v7812_v23, %v4259_v43 }
 0x431   : > { %v4270_v44 = vmul.f32 1.442695, %v4263_v37 }
 0x433   : > { %8029 = vpow2.f32 %v4270_v44 }
 0x43d   : > { %v8991_v46 = vpop.eup %8029 }
 0x43e   : > { %v4281_v47 = vsel %vm2439_vm2, %v8991_v46, 0.0 }
 0x448   : > { %4282 = vadd.xlane.f32.xlu0 %v4281_v47 }
 0x474   : > { %v4274_v49 = vpop.xlane.xlu1 %4273 }
 0x475   : > { %8031 = vrcp.f32 %v4274_v49 }
 0x478   : > { %v2294_v45 = vpop.permute.xlu1 %2293 }
 0x479   : > { %v2312_v53 = vcombine.low %v2288_v48, %v2294_v45  ;;  %v2313_v54 = vcombine.high %v2288_v48, %v2294_v45 }
 0x47b   : > { %v2320_v61 = vrot.slane %v2312_v53, %v8812_v62  ;;  %v2327_v63 = vrot.slane %v2313_v54, %v8812_v62 }
 0x47f   : > { %v8032_v50 = vpop.eup %8031 }
 0x480   : > { %v4292_v52 = vmul.f32 %v8032_v50, %v8024_v30 }
 0x482   : > { %v4297_v60 = vsel %vm2439_vm2, %v4292_v52, 0 }
 0x483   : > { %v9000_v2 = vand.u32 4294901760, %v4297_v60 }
 0x485   : > { %v9007_v13 = vsub.f32 %v4297_v60, %v9000_v2 }
 0x487   : > { %v4367_v23 = vand.u32 4294901760, %v9007_v13 }
 0x489   : > { %v4368_v31 = vsub.f32 %v9007_v13, %v4367_v23 }
 0x4a0   : > { %v4277_v51 = vpop.xlane.xlu0 %4276 }
 0x4a1   : > { %8033 = vrcp.f32 %v4277_v51 }
 0x4a4   : > { %v2291_v56 = vpop.permute.xlu0 %2290 }
 0x4a5   : > { %v2296_v58 = vcombine.low %v7808_v21, %v2291_v56  ;;  %v2297_v59 = vcombine.high %v7808_v21, %v2291_v56 }
 0x4a7   : > { %v2304_v55 = vrot.slane %v2296_v58, %v8812_v62  ;;  %v2311_v57 = vrot.slane %v2297_v59, %v8812_v62 }
 0x4a9   : > { %v2328_v3 = vcombine.low %v2304_v55, %v2320_v61  ;;  %v2329_v4 = vcombine.high %v2304_v55, %v2320_v61  ;;  %v2344_v29 = vcombine.low %v2311_v57, %v2327_v63  ;;  %v2345_v5 = vcombine.high %v2311_v57, %v2327_v63  ;;  %v4280_v47 = vpop.xlane.xlu1 %4279 }
 0x4aa   : > { %8035 = vrcp.f32 %v4280_v47 }
 0x4ab   : > { %v8034_v7 = vpop.eup %8033  ;;  %v2336_v8 = vrot.slane %v2328_v3, %v8814_v6  ;;  %v2343_v9 = vrot.slane %v2329_v4, %v8814_v6  ;;  %v2352_v10 = vrot.slane %v2344_v29, %v8814_v6  ;;  %v2359_v11 = vrot.slane %v2345_v5, %v8814_v6 }
 0x4ac   : > { %v4293_v12 = vmul.f32 %v8034_v7, %v8026_v39  ;;  %v4369_v39 = vand.u32 4294901760, %v4368_v31  ;;  %v6246_v31 = vld [vmem:[#allocation10 + $0x8] sm:$0xff] }
 0x4ad   : > { %v2364_v14 = vcombine.low %v2336_v8, %v2343_v9  ;;  %v6930_v15 = vcombine.high %v2336_v8, %v2343_v9  ;;  %v2380_v16 = vcombine.low %v2352_v10, %v2359_v11  ;;  %v6931_v17 = vcombine.high %v2352_v10, %v2359_v11 }
 0x4ae   : > { %v4746_v18 = vsel %vm2439_vm2, %v4293_v12, 0 }
 0x4af   : > { %v2371_v19 = vrot.slane %v2364_v14, %v8812_v62  ;;  %v2379_v20 = vrot.slane %v6930_v15, %v8812_v62  ;;  %v2387_v21 = vrot.slane %v2380_v16, %v8812_v62  ;;  %v2395_v22 = vrot.slane %v6931_v17, %v8812_v62 }
 0x4b0   : > { %v9015_v24 = vand.u32 4294901760, %v4746_v18 }
 0x4b1   : > { %v2396_v25 = vcombine.low %v2371_v19, %v2379_v20  ;;  %v2412_v26 = vcombine.low %v2387_v21, %v2395_v22  ;;  %v2397_v51 = vcombine.high %v2371_v19, %v2379_v20  ;;  %v2413_v52 = vcombine.high %v2387_v21, %v2395_v22 }
 0x4b2   : > { %v4815_v27 = vsub.f32 %v4746_v18, %v9015_v24 }
 0x4b3   : > { %v2404_v28 = vrot.slane %v2396_v25, %v8814_v6  ;;  %v2420_v30 = vrot.slane %v2412_v26, %v8814_v6  ;;  %v2411_v56 = vrot.slane %v2397_v51, %v8814_v6  ;;  %v2427_v58 = vrot.slane %v2413_v52, %v8814_v6 }
 0x4b4   : > { %v4816_v32 = vand.u32 4294901760, %v4815_v27  ;;  %v8036_v53 = vpop.eup %8035 }
 0x4b5   : > { %v2428_v33 = vcombine.low %v2404_v28, %v2420_v30  ;;  %v2429_v34 = vcombine.high %v2404_v28, %v2420_v30  ;;  %v4294_v54 = vmul.f32 %v8036_v53, %v8986_v41  ;;  %v2430_v59 = vcombine.low %v2411_v56, %v2427_v58  ;;  %v6245_v30 = vld [vmem:[#allocation10] sm:$0xff] }
 0x4b6   : > { %v4817_v35 = vsub.f32 %v4815_v27, %v4816_v32  ;;  %v2431_v3 = vcombine.high %v2411_v56, %v2427_v58 }
 0x4b7   : > { %v9021_v36 = vand.u32 4294901760, %v2428_v33  ;;  %v9023_v38 = vand.u32 4294901760, %v2429_v34  ;;  %v5195_v60 = vsel %vm2439_vm2, %v4294_v54, 0  ;;  %v9065_v63 = vand.u32 4294901760, %v2430_v59 }
 0x4b8   : > { %v4818_v40 = vand.u32 4294901760, %v4817_v35  ;;  %v9060_v41 = vand.u32 4294901760, %v5195_v60  ;;  %v9079_v29 = vand.u32 4294901760, %v2431_v3 }
 0x4b9   : > { %7477 = vmatpush3.msra.mxu0 %v9021_v36  ;;  %v4377_v42 = vsub.f32 %v2428_v33, %v9021_v36  ;;  %7507 = vmatpush3.msra.mxu1 %v9023_v38  ;;  %v4826_v43 = vsub.f32 %v2429_v34, %v9023_v38  ;;  %v5275_v57 = vsub.f32 %v2430_v59, %v9065_v63  ;;  %v6263_v33 = vand.u32 4294901760, %v6246_v31 }
 0x4ba   : > { %7479 = vmatmul.mubr.f32.vlgmr.msra.gmra.mrb[6].mxu0 %v4369_v39  ;;  %7509 = vmatmul.mubr.f32.vlgmr.msra.gmra.mrb[8].mxu1 %v4818_v40  ;;  %v5264_v55 = vsub.f32 %v5195_v60, %v9060_v41  ;;  %v5724_v10 = vsub.f32 %v2431_v3, %v9079_v29  ;;  %v6248_v39 = vld [vmem:[#allocation10 + $0x18] sm:$0xff] }
 0x4bb   : > { %7481 = vmatprep.subr.mxu0 %v8269_v1  ;;  %7511 = vmatprep.subr.mxu1 %v8269_v1  ;;  %v4378_v37 = vand.u32 4294901760, %v4377_v42  ;;  %v4827_v44 = vand.u32 4294901760, %v4826_v43  ;;  %v5276_v5 = vand.u32 4294901760, %v5275_v57  ;;  %v9138_v35 = vsub.f32 %v6246_v31, %v6263_v33 }
 0x4bc   : > { %7483 = vmatprep.mubr.msk.f32.mxu0 %vm8268_vm0, %v8269_v1  ;;  %7513 = vmatprep.mubr.msk.f32.mxu1 %vm8268_vm0, %v8269_v1  ;;  %v5265_v4 = vand.u32 4294901760, %v5264_v55 }
 0x4bd   : > { %v4379_v48 = vsub.f32 %v4377_v42, %v4378_v37  ;;  %v4828_v49 = vsub.f32 %v4826_v43, %v4827_v44  ;;  %v5277_v11 = vsub.f32 %v5275_v57, %v5276_v5 }
 0x4be   : > { %v5266_v8 = vsub.f32 %v5264_v55, %v5265_v4 }
 0x4bf   : > { %v4380_v50 = vand.u32 4294901760, %v4379_v48  ;;  %v4829_v45 = vand.u32 4294901760, %v4828_v49 }
 0x4c1   : > { %7482 = vmatpush3.msra.mxu0 %v4380_v50  ;;  %7512 = vmatpush3.msra.mxu1 %v4829_v45  ;;  %v6269_v50 = vand.u32 4294901760, %v6248_v39 }
 0x4c2   : > { %7484 = vmatmul.mubr.f32.vlgmr.msra.gmra.mrb[6].mxu0 %v9000_v2  ;;  %7486 = vmatprep.subr.mxu0 %v8269_v1 }
 0x4c3   : > { %7514 = vmatmul.mubr.f32.vlgmr.msra.gmra.mrb[8].mxu1 %v9015_v24  ;;  %7516 = vmatprep.subr.mxu1 %v8269_v1  ;;  %v9154_v56 = vsub.f32 %v6248_v39, %v6269_v50 }
 0x4c4   : > { %7487 = vmatpush3.msra.mxu0 %v4377_v42  ;;  %7517 = vmatpush3.msra.mxu1 %v4826_v43 }
 0x4c5   : > { %7488 = vmatprep.mubr.msk.f32.mxu0 %vm8268_vm0, %v8269_v1  ;;  %7491 = vmatprep.subr.mxu0 %v8269_v1 }
 0x4c6   : > { %7518 = vmatprep.mubr.msk.f32.mxu1 %vm8268_vm0, %v8269_v1  ;;  %7521 = vmatprep.subr.mxu1 %v8269_v1 }
 0x4ca   : > { %7489 = vmatmul.mubr.f32.vlgmr.msra.gmra.mrb[6].mxu0 %v9007_v13  ;;  %v5267_v13 = vand.u32 4294901760, %v5266_v8 }
 0x4cb   : > { %7492 = vmatpush3.msra.mxu0 %v9021_v36  ;;  %7519 = vmatmul.mubr.f32.vlgmr.msra.gmra.mrb[8].mxu1 %v4815_v27 }
 0x4cc   : > { %7522 = vmatpush3.msra.mxu1 %v9023_v38  ;;  %7493 = vmatprep.mubr.msk.f32.mxu0 %vm8268_vm0, %v8269_v1 }
 0x4cd   : > { %7496 = vmatprep.subr.mxu0 %v8269_v1  ;;  %7523 = vmatprep.mubr.msk.f32.mxu1 %vm8268_vm0, %v8269_v1 }
 0x4ce   : > { %7526 = vmatprep.subr.mxu1 %v8269_v1 }
 0x4d2   : > { %7494 = vmatmul.mubr.f32.vlgmr.msra.gmra.mrb[6].mxu0 %v4367_v23 }
 0x4d3   : > { %7497 = vmatpush3.msra.mxu0 %v4378_v37  ;;  %7524 = vmatmul.mubr.f32.vlgmr.msra.gmra.mrb[8].mxu1 %v4816_v32  ;;  %v6260_v32 = vand.u32 4294901760, %v6245_v30 }
 0x4d4   : > { %7527 = vmatpush3.msra.mxu1 %v4827_v44  ;;  %7498 = vmatprep.mubr.msk.f32.mxu0 %vm8268_vm0, %v8269_v1  ;;  %v6348_v44 = vand.u32 4294901760, %v9138_v35 }
 0x4d5   : > { %v4283_v61 = vpop.xlane.xlu0 %4282  ;;  %7501 = vmatprep.subr.mxu0 %v8269_v1  ;;  %7528 = vmatprep.mubr.msk.f32.mxu1 %vm8268_vm0, %v8269_v1  ;;  %v9136_v34 = vsub.f32 %v6245_v30, %v6260_v32 }
 0x4d6   : > { %8037 = vrcp.f32 %v4283_v61  ;;  %7531 = vmatprep.subr.mxu1 %v8269_v1  ;;  %v6349_v53 = vsub.f32 %v9138_v35, %v6348_v44 }
 0x4d7   : > { %v6341_v37 = vand.u32 4294901760, %v9136_v34 }
 0x4d9   : > { %v6342_v52 = vsub.f32 %v9136_v34, %v6341_v37 }
 0x4da   : > { %7499 = vmatmul.mubr.f32.vlgmr.msra.gmra.mrb[6].mxu0 %v9000_v2 }
 0x4db   : > { %7502 = vmatpush3.msra.mxu0 %v9021_v36  ;;  %7529 = vmatmul.mubr.f32.vlgmr.msra.gmra.mrb[8].mxu1 %v9015_v24  ;;  %v6343_v61 = vand.u32 4294901760, %v6342_v52  ;;  %v6935_v52 = vld [vmem:[%s9302_s8] ss:$0 sm:$0xff]  ;;  %s9305_s8 = sld [smem:[#allocation21_spill]] }
 0x4dc   : > { %7532 = vmatpush3.msra.mxu1 %v9023_v38  ;;  %7503 = vmatprep.mubr.msk.f32.mxu0 %vm8268_vm0, %v8269_v1  ;;  %v6247_v38 = vld [vmem:[#allocation10 + $0x10] sm:$0xff] }
 0x4dd   : > { %7533 = vmatprep.mubr.msk.f32.mxu1 %vm8268_vm0, %v8269_v1  ;;  %7536 = vmatprep.subr.mxu0 %v8269_v1  ;;  %v6266_v49 = vand.u32 4294901760, %v6247_v38 }
 0x4de   : > { %7566 = vmatprep.subr.mxu1 %v8269_v1 }
 0x4df   : > { %v9152_v54 = vsub.f32 %v6247_v38, %v6266_v49 }
 0x4e0   : > { %v8038_v7 = vpop.eup %8037 }
 0x4e1   : > { %v4295_v9 = vmul.f32 %v8038_v7, %v8991_v46  ;;  %v5278_v46 = vand.u32 4294901760, %v5277_v11  ;;  %v6362_v7 = vand.u32 4294901760, %v9154_v56 }
 0x4e2   : > { %7504 = vmatmul.mubr.f32.vlgmr.msra.gmra.mrb[6].mxu0 %v9000_v2  ;;  %v5725_v2 = vand.u32 4294901760, %v5724_v10 }
 0x4e3   : > { %7534 = vmatmul.mubr.f32.vlgmr.msra.gmra.mrb[8].mxu1 %v9015_v24  ;;  %7537 = vmatpush3.msra.mxu0 %v9065_v63  ;;  %v5644_v12 = vsel %vm2439_vm2, %v4295_v9, 0 }
 0x4e4   : > { %7567 = vmatpush3.msra.mxu1 %v9079_v29  ;;  %7538 = vmatprep.mubr.msk.f32.mxu0 %vm8268_vm0, %v8269_v1  ;;  %v5712_v14 = vand.u32 4294901760, %v5644_v12  ;;  %v5726_v17 = vsub.f32 %v5724_v10, %v5725_v2 }
 0x4e5   : > { %7541 = vmatprep.subr.mxu0 %v8269_v1  ;;  %7568 = vmatprep.mubr.msk.f32.mxu1 %vm8268_vm0, %v8269_v1 }
 0x4e6   : > { %7539 = vmatmul.mubr.f32.vlgmr.msra.gmra.mrb[8].mxu0 %v5267_v13  ;;  %7571 = vmatprep.subr.mxu1 %v8269_v1  ;;  %v5713_v15 = vsub.f32 %v5644_v12, %v5712_v14  ;;  %v5727_v20 = vand.u32 4294901760, %v5726_v17  ;;  %v6363_v13 = vsub.f32 %v9154_v56, %v6362_v7 }
 0x4e7   : > { %7542 = vmatpush3.msra.mxu0 %v5278_v46  ;;  %7543 = vmatprep.mubr.msk.f32.mxu0 %vm8268_vm0, %v8269_v1 }
 0x4e8   : > { %7546 = vmatprep.subr.mxu0 %v8269_v1  ;;  %v5714_v16 = vand.u32 4294901760, %v5713_v15  ;;  %v6364_v17 = vand.u32 4294901760, %v6363_v13 }
 0x4ea   : > { %v5715_v18 = vsub.f32 %v5713_v15, %v5714_v16 }
 0x4ec   : > { %v5716_v19 = vand.u32 4294901760, %v5715_v18 }
 0x4ee   : > { %7544 = vmatmul.mubr.f32.vlgmr.msra.gmra.mrb[8].mxu0 %v9060_v41  ;;  %7569 = vmatmul.mubr.f32.vlgmr.msra.gmra.mrb[10].mxu1 %v5716_v19 }
 0x4ef   : > { %7547 = vmatpush3.msra.mxu0 %v5275_v57  ;;  %7572 = vmatpush3.msra.mxu1 %v5727_v20 }
 0x4f0   : > { %7548 = vmatprep.mubr.msk.f32.mxu0 %vm8268_vm0, %v8269_v1  ;;  %7551 = vmatprep.subr.mxu0 %v8269_v1 }
 0x4f1   : > { %7573 = vmatprep.mubr.msk.f32.mxu1 %vm8268_vm0, %v8269_v1  ;;  %7576 = vmatprep.subr.mxu1 %v8269_v1 }
 0x4f6   : > { %7549 = vmatmul.mubr.f32.vlgmr.msra.gmra.mrb[8].mxu0 %v5264_v55  ;;  %7574 = vmatmul.mubr.f32.vlgmr.msra.gmra.mrb[10].mxu1 %v5712_v14 }
 0x4f7   : > { %7552 = vmatpush3.msra.mxu0 %v9065_v63  ;;  %7577 = vmatpush3.msra.mxu1 %v5724_v10 }
 0x4f8   : > { %7553 = vmatprep.mubr.msk.f32.mxu0 %vm8268_vm0, %v8269_v1  ;;  %7556 = vmatprep.subr.mxu0 %v8269_v1 }
 0x4f9   : > { %7578 = vmatprep.mubr.msk.f32.mxu1 %vm8268_vm0, %v8269_v1  ;;  %7581 = vmatprep.subr.mxu1 %v8269_v1 }
 0x4fe   : > { %7554 = vmatmul.mubr.f32.vlgmr.msra.gmra.mrb[8].mxu0 %v5265_v4  ;;  %7579 = vmatmul.mubr.f32.vlgmr.msra.gmra.mrb[10].mxu1 %v5713_v15 }
 0x4ff   : > { %7557 = vmatpush3.msra.mxu0 %v5276_v5  ;;  %7582 = vmatpush3.msra.mxu1 %v9079_v29  ;;  %v6355_v5 = vand.u32 4294901760, %v9152_v54 }
 0x500   : > { %7558 = vmatprep.mubr.msk.f32.mxu0 %vm8268_vm0, %v8269_v1  ;;  %7561 = vmatprep.subr.mxu0 %v8269_v1 }
 0x501   : > { %7583 = vmatprep.mubr.msk.f32.mxu1 %vm8268_vm0, %v8269_v1  ;;  %7586 = vmatprep.subr.mxu1 %v8269_v1  ;;  %v6356_v12 = vsub.f32 %v9152_v54, %v6355_v5  ;;  %v7798_v38 = vpack.c.bf16 %v6362_v7, %v6355_v5  ;;  %v8041_v5 = vld [vmem:[%s8578_s15] sm:$0xff]  ;;  %s6777_s15 = scalar_lea.sflag [#allocation4], %s8572_s1 }
 0x506   : > { %7559 = vmatmul.mubr.f32.vlgmr.msra.gmra.mrb[8].mxu0 %v9060_v41  ;;  %7584 = vmatmul.mubr.f32.vlgmr.msra.gmra.mrb[10].mxu1 %v5714_v16  ;;  %v6357_v16 = vand.u32 4294901760, %v6356_v12 }
 0x507   : > { %7562 = vmatpush3.msra.mxu0 %v9065_v63  ;;  %7587 = vmatpush3.msra.mxu1 %v5725_v2  ;;  %v6350_v63 = vand.u32 4294901760, %v6349_v53 }
 0x508   : > { %7563 = vmatprep.mubr.msk.f32.mxu0 %vm8268_vm0, %v8269_v1  ;;  %7588 = vmatprep.mubr.msk.f32.mxu1 %vm8268_vm0, %v8269_v1 }
 0x509   : > { %7591 = vmatprep.subr.mxu1 %v8269_v1  ;;  %7770 = vmatprep.subr.bf16.mxu0 %v8267_v0 }
 0x50e   : > { %7564 = vmatmul.mubr.f32.vlgmr.msra.gmra.mrb[8].mxu0 %v9060_v41  ;;  %7589 = vmatmul.mubr.f32.vlgmr.msra.gmra.mrb[10].mxu1 %v5712_v14 }
 0x50f   : > { %7592 = vmatpush3.msra.mxu1 %v9079_v29  ;;  %7593 = vmatprep.mubr.msk.f32.mxu1 %vm8268_vm0, %v8269_v1  ;;  %v7777_v29 = vpack.c.bf16 %v6350_v63, %v6343_v61 }
 0x510   : > { %7776 = vmatprep.subr.bf16.mxu1 %v8267_v0  ;;  %7604 = vmatprep.mubr.msk.f32.mxu0 %vm8268_vm0, %v8269_v1 }
 0x516   : > { %7594 = vmatmul.mubr.f32.vlgmr.msra.gmra.mrb[10].mxu1 %v5712_v14 }
 0x517   : > { %7615 = vmatprep.mubr.msk.f32.mxu1 %vm8268_vm0, %v8269_v1  ;;  %7778 = vmatpush3.bf16.msra.mxu1 %v7777_v29 }
 0x518   : > { %7779 = vmatprep.subr.bf16.mxu1 %v8267_v0 }
 0x5b5   : > { %v4741_v21 = vpop.f32.mrb[6].mxu0 }
 0x5b6   : > { %v5190_v22 = vpop.f32.mrb[8].mxu1  ;;  %v7505_v23 = vpop.f32.mrb[7].mxu0 }
 0x5b7   : > { %v7535_v24 = vpop.f32.mrb[9].mxu1  ;;  %v7771_v23 = vpack.c.bf16 %v6263_v33, %v6260_v32  ;;  %v7786_v32 = vpack.c.bf16 %v9154_v56, %v9152_v54  ;;  %v7795_v33 = vpack.c.bf16 %v6348_v44, %v6341_v37 }
 0x5b9   : > { %7772 = vmatpush3.bf16.msra.mxu0 %v7771_v23 }
 0x5ba   : > { %7773 = vmatprep.subr.bf16.mxu0 %v8267_v0 }
 0x5e1   : > { %v5639_v25 = vpop.f32.mrb[8].mxu0 }
 0x5e2   : > { %v6092_v26 = vcombine.low %v4741_v21, %v5639_v25  ;;  %v6093_v27 = vcombine.high %v4741_v21, %v5639_v25  ;;  %v7565_v28 = vpop.f32.mrb[9].mxu0 }
 0x5e4   : > { %v6100_v47 = vrot.slane %v6092_v26, %v8812_v62  ;;  %v6107_v48 = vrot.slane %v6093_v27, %v8812_v62 }
 0x5e9   : > { %v6088_v36 = vpop.f32.mrb[10].mxu1 }
 0x5ea   : > { %v6108_v40 = vcombine.low %v5190_v22, %v6088_v36  ;;  %v6109_v42 = vcombine.high %v5190_v22, %v6088_v36  ;;  %v7595_v43 = vpop.f32.mrb[11].mxu1  ;;  %v7780_v22 = vpack.c.bf16 %v6364_v17, %v6357_v16  ;;  %v6936_v16 = vld [vmem:[%s9303_s16] ss:$0 sm:$0xff] }
 0x5ec   : > { %v6116_v45 = vrot.slane %v6108_v40, %v8812_v62  ;;  %v6123_v51 = vrot.slane %v6109_v42, %v8812_v62  ;;  %7781 = vmatpush3.bf16.msra.mxu1 %v7780_v22 }
 0x5ed   : > { %7788 = vmatprep.subr.bf16.mxu1 %v8267_v0 }
 0x5ee   : > { %v6124_v58 = vcombine.low %v6100_v47, %v6116_v45  ;;  %v6125_v59 = vcombine.high %v6100_v47, %v6116_v45  ;;  %v6140_v60 = vcombine.low %v6107_v48, %v6123_v51  ;;  %v6141_v41 = vcombine.high %v6107_v48, %v6123_v51 }
 0x5f0   : > { %v6132_v55 = vrot.slane %v6124_v58, %v8814_v6  ;;  %v6139_v57 = vrot.slane %v6125_v59, %v8814_v6  ;;  %v6148_v3 = vrot.slane %v6140_v60, %v8814_v6  ;;  %v6155_v4 = vrot.slane %v6141_v41, %v8814_v6 }
 0x5f2   : > { %v6160_v8 = vcombine.low %v6132_v55, %v6139_v57  ;;  %v6933_v9 = vcombine.high %v6132_v55, %v6139_v57  ;;  %v6176_v10 = vcombine.low %v6148_v3, %v6155_v4  ;;  %v6934_v11 = vcombine.high %v6148_v3, %v6155_v4 }
 0x5f4   : > { %v6167_v14 = vrot.slane %v6160_v8, %v8812_v62  ;;  %v6175_v46 = vrot.slane %v6933_v9, %v8812_v62  ;;  %v6183_v2 = vrot.slane %v6176_v10, %v8812_v62  ;;  %v6191_v15 = vrot.slane %v6934_v11, %v8812_v62 }
 0x5f5   : > { %v7774_v62 = vpack.c.bf16 %v6269_v50, %v6266_v49 }
 0x5f6   : > { %v6193_v18 = vcombine.high %v6167_v14, %v6175_v46  ;;  %v6209_v19 = vcombine.high %v6183_v2, %v6191_v15  ;;  %v6192_v20 = vcombine.low %v6167_v14, %v6175_v46  ;;  %v6208_v21 = vcombine.low %v6183_v2, %v6191_v15 }
 0x5f7   : > { %7775 = vmatpush3.bf16.msra.mxu0 %v7774_v62 }
 0x5f8   : > { %v6207_v24 = vrot.slane %v6193_v18, %v8814_v6  ;;  %v6223_v25 = vrot.slane %v6209_v19, %v8814_v6  ;;  %v6200_v26 = vrot.slane %v6192_v20, %v8814_v6  ;;  %v6216_v27 = vrot.slane %v6208_v21, %v8814_v6  ;;  %7782 = vmatprep.subr.bf16.mxu0 %v8267_v0  ;;  %v6937_v18 = vld [vmem:[%s9304_s17] ss:$0 sm:$0xff] }
 0x5f9   : > { %v7783_v6 = vpack.c.bf16 %v9138_v35, %v9136_v34 }
 0x5fa   : > { %v6226_v28 = vcombine.low %v6207_v24, %v6223_v25  ;;  %v6225_v30 = vcombine.high %v6200_v26, %v6216_v27  ;;  %v6227_v31 = vcombine.high %v6207_v24, %v6223_v25  ;;  %v6224_v36 = vcombine.low %v6200_v26, %v6216_v27 }
 0x5fc   : > { %6233 = vrot.lane.b32.xlu1 %v6226_v28, %s8275_s26  ;;  %6229 = vrot.lane.b32.xlu0 %v6225_v30, %s8276_s13  ;;  %s6939_s26 = sshll.u32 %s8365_s27, 7  ;;  %s497_s13 = scalar_lea.vmem [#allocation11], %s6917_s30 }
 0x5fd   : > { %s9218_s0 = scalar_lea.hbm %s9305_s8, %s6939_s26  ;;  %s8278_s27 = smov [#allocation11]  }
 0x5fe   : > { %s8188_s30 = sshll.u32 %s8278_s27, 4  ;;  %s8189_s30 = int_to_ptr.vmem [resolvable:$false] %s8188_s30 }
 0x5ff   : > { %s8190_s16 = scalar_lea.vmem %s8189_s30, 256 }
 0x600   : > { %6237 = vrot.lane.b32.xlu1 %v6227_v31, %s8277_s9  ;;  %s6790_s9 = sshll.u32 %s497_s13, 4  ;;  %s9220_s9 = int_to_ptr.vmem [resolvable:$true] %s6790_s9 }
 0x601   : > { %s8184_s14 = scalar_lea.vmem %s9220_s9, 128  ;;  %p8191_p3 = scmp.lt.s32.totalorder %s9220_s9, %s8189_s30 }
 0x602   : > { %p8185_p5 = scmp.ne.s32.totalorder %s9220_s9, %s8184_s14  ;;  %p8192_p13 = scmp.lt.s32.totalorder %s8190_s16, %s8184_s14 }
 0x604   : > { %p8186_p9 = pnand %p8185_p5, %p9306_p7  ;;  %p8193_p0 = por %p8192_p13, %p8191_p3 }
 0x606   : > { %p8187_p12 = pneg %p8186_p9 }
 0x608   : > { %p8194_p2 = pnand %p8193_p0, %p8187_p12 }
 0x66e   : > { %v6234_v39 = vpop.permute.xlu1 %6233  ;;  %v6230_v40 = vpop.permute.xlu0 %6229 }
 0x66f   : > { %v6240_v42 = vsel %vm2439_vm2, %v6224_v36, %v6230_v40 }
 0x670   : > { %v6242_v47 = vsel %vm6241_vm3, %v6240_v42, %v6234_v39 }
 0x672   : > { %v6238_v43 = vpop.permute.xlu1 %6237 }
 0x673   : > { %v6244_v48 = vsel %vm6243_vm4, %v6242_v47, %v6238_v43 }
 0x674   : > { %v6257_v49 = vsel %vm513_vm1, %v6244_v48, 0 }
 0x675   : > { %v6328_v50 = vand.u32 4294901760, %v6257_v49 }
 0x677   : > { %v6329_v45 = vsub.f32 %v6257_v49, %v6328_v50  ;;  %7616 = vmatmul.mubr.f32.vlgmr.msra.gmra.mrb[12].mxu1 %v6328_v50 }
 0x678   : > { %7790 = vmatpush3.bf16.msra.mxu1 %v7771_v23  ;;  %7637 = vmatprep.mubr.msk.f32.mxu1 %vm8268_vm0, %v8269_v1 }
 0x679   : > { %7791 = vmatprep.subr.bf16.mxu1 %v8267_v0  ;;  %v6330_v34 = vand.u32 4294901760, %v6329_v45 }
 0x67b   : > { %v6331_v35 = vsub.f32 %v6329_v45, %v6330_v34 }
 0x67c   : > { %7793 = vmatpush3.bf16.msra.mxu1 %v7774_v62 }
 0x67d   : > { %7800 = vmatprep.subr.bf16.mxu1 %v8267_v0  ;;  %v6332_v37 = vand.u32 4294901760, %v6331_v35 }
 0x67f   : > { %7638 = vmatmul.mubr.f32.vlgmr.msra.gmra.mrb[14].mxu1 %v6330_v34  ;;  %7605 = vmatmul.mubr.f32.vlgmr.msra.gmra.mrb[10].mxu0 %v6332_v37 }
 0x680   : > { %7784 = vmatpush3.bf16.msra.mxu0 %v7783_v6  ;;  %7802 = vmatpush3.bf16.msra.mxu1 %v7771_v23 }
 0x681   : > { %7785 = vmatprep.subr.bf16.mxu0 %v8267_v0  ;;  %7803 = vmatprep.subr.bf16.mxu1 %v8267_v0 }
 0x682   : > { %7626 = vmatprep.mubr.msk.f32.mxu0 %vm8268_vm0, %v8269_v1  ;;  %7659 = vmatprep.mubr.msk.f32.mxu1 %vm8268_vm0, %v8269_v1 }
 0x684   : > { %7787 = vmatpush3.bf16.msra.mxu0 %v7786_v32  ;;  %7805 = vmatpush3.bf16.msra.mxu1 %v7774_v62 }
 0x685   : > { %7794 = vmatprep.subr.bf16.mxu0 %v8267_v0 }
 0x687   : > { %7627 = vmatmul.mubr.f32.vlgmr.msra.gmra.mrb[12].mxu0 %v6329_v45  ;;  %7660 = vmatmul.mubr.f32.vlgmr.msra.gmra.mrb[16].mxu1 %v6328_v50 }
 0x688   : > { %7796 = vmatpush3.bf16.msra.mxu0 %v7795_v33  ;;  %7648 = vmatprep.mubr.msk.f32.mxu0 %vm8268_vm0, %v8269_v1 }
 0x689   : > { %7797 = vmatprep.subr.bf16.mxu0 %v8267_v0 }
 0x68c   : > { %7799 = vmatpush3.bf16.msra.mxu0 %v7798_v38 }
 0x68f   : > { %7649 = vmatmul.mubr.f32.vlgmr.msra.gmra.mrb[14].mxu0 %v6328_v50 }
 0x74a   : > { %v6425_v44 = vpop.f32.mrb[12].mxu1 }
 0x74b   : > { %v7617_v51 = vpop.f32.mrb[13].mxu1 }
 0x752   : > { %v6582_v53 = vpop.f32.mrb[14].mxu1  ;;  %v6334_v54 = vpop.f32.mrb[10].mxu0 }
 0x753   : > { %v6335_v56 = vadd.f32 %v6935_v52, %v6334_v54  ;;  %v7639_v58 = vpop.f32.mrb[15].mxu1  ;;  %v7606_v59 = vpop.f32.mrb[11].mxu0 }
 0x755   : > { %v6426_v60 = vadd.f32 %v6425_v44, %v6335_v56 }
 0x75a   : > { %v6505_v41 = vpop.f32.mrb[12].mxu0  ;;  %v6740_v61 = vpop.f32.mrb[16].mxu1 }
 0x75b   : > { %v6506_v1 = vadd.f32 %v6505_v41, %v6426_v60  ;;  %v7628_v63 = vpop.f32.mrb[13].mxu0  ;;  %v7661_v0 = vpop.f32.mrb[17].mxu1 }
 0x75d   : > { %v6583_v55 = vadd.f32 %v6582_v53, %v6506_v1 }
 0x762   : > { %v6665_v57 = vpop.f32.mrb[14].mxu0 }
 0x763   : > { %v6666_v3 = vadd.f32 %v6665_v57, %v6583_v55  ;;  %v7650_v4 = vpop.f32.mrb[15].mxu0 }
 0x765   : > { %v6741_v29 = vadd.f32 %v6740_v61, %v6666_v3 }
 0x767   : > { %v6744_v7 = vadd.f32 %v8041_v5, %v6741_v29 }
 0x769   : > { %v6745_v8 = vsel %vm513_vm1, %v6744_v7, 0.0 }
 0x76a   : > { %6746 = vadd.xlane.f32.xlu0 %v6745_v8 }
 0x7f7   : > { %v6747_v9 = vpop.xlane.xlu0 %6746 }
 0x7f8   : > { %v6749_v10 = vmul.f32 0.03125, %v6747_v9 }
 0x7fa   : > { %v6750_v11 = vsub.f32 %v6744_v7, %v6749_v10 }
 0x7fc   : > { %v6751_v12 = vmul.f32 %v6750_v11, %v6750_v11 }
 0x7fe   : > { %v6752_v13 = vsel %vm513_vm1, %v6751_v12, 0.0 }
 0x7ff   : > { %6753 = vadd.xlane.f32.xlu1 %v6752_v13 }
 0x88c   : > { %v6754_v14 = vpop.xlane.xlu1 %6753 }
 0x88d   : > { %v6755_v46 = vmul.f32 0.03125, %v6754_v14 }
 0x88f   : > { %v6756_v2 = vadd.f32 1e-12, %v6755_v46 }
 0x891   : > { %8039 = vrsqrt.f32 %v6756_v2 }
 0x89b   : > { %v8040_v15 = vpop.eup %8039 }
 0x89c   : > { %v6758_v17 = vmul.f32 %v8040_v15, %v6750_v11 }
 0x89e   : > { %v6766_v19 = vmul.f32 %v6936_v16, %v6758_v17 }
 0x8a0   : > { %v6774_v20 = vadd.f32 %v6937_v18, %v6766_v19 }
 0x8a2   : > { %6775 = vst.msk [vmem:[%s497_s13] sm:$0xff] %vm513_vm1, %v6774_v20 }
 0x8a3   : > { %8197 = shalt.err (!%p8194_p2)
}
 0x8a4   : > { %s8198_s1 = scalar_lea.hbm %s9218_s0, 128  ;;  %s8202_s17 = scalar_lea.hbm %s9305_s8, 256 }
 0x8a5   : > { %p8199_p8 = scmp.ne.s32.totalorder %s9218_s0, %s8198_s1  ;;  %p8203_p11 = scmp.lt.u32.totalorder %s9218_s0, %s9305_s8 }
 0x8a6   : > { %p8204_p1 = scmp.lt.u32.totalorder %s8202_s17, %s8198_s1  ;;  %p8206_p5 = scmp.lt.u32.totalorder %s8198_s1, %s9218_s0 }
 0x8a7   : > { %p8200_p4 = pnand %p8199_p8, %p9306_p7 }
 0x8a8   : > { %p8205_p6 = por %p8204_p1, %p8203_p11 }
 0x8a9   : > { %p8201_p10 = pneg %p8200_p4 }
 0x8aa   : > { %p8207_p9 = por %p8206_p5, %p8205_p6 }
 0x8ac   : > { %p8208_p12 = pnand %p8207_p9, %p8201_p10 }
 0x8ae   : > { %8211 = shalt.err (!%p8208_p12)
}
 0x8af   : > { %7941 = dma.vmem_to_hbm [thread:$0]  (%p9306_p7), %s9220_s9, 128, %s9218_s0, %s6777_s15  }
 0x8b0 PF: > { %s6802_s12 = sand.u32 1, %s8246_s21   ;;  %p9307_p3 = scmp.ne.s32.totalorder %s9294_s29, 0 }
 0x8b1   : > { %p9308_p13 = scmp.ge.s32.totalorder %s8258_s24, 2  ;;  %s6803_s18 = scalar_lea.sflag [#allocation4], %s6802_s12 }
 0x8b3   : > { %p7961_p0 = pnand %p9308_p13, %p9307_p3 }
 0x8b5   : > { %8241 = dma.done.wait (!%p7961_p0), %s6803_s18, 128  }
 0x8b6   : > { %8243 = vsyncadd (!%p7961_p0), %s6803_s18, 4294967168  ;;  %p27_p2 = scmp.ge.s32.totalorder %s8496_s25, 4   ;;  %s9309_s21 = smov %s8250_s22 }
 0x8b7   : > { %s9310_s22 = smov %s8254_s23  ;;  %s9311_s23 = smov %s8507_s19 }
 0x8b8   : > { %s9312_s24 = smov %s8496_s25  ;;  %29 = sbr.rel (!%p27_p2) target bundleno = 14 (0xe), region = 132 }
 0x8bf   :  { %6808 = vsyncpa [#allocation3], 1 }
 0x8c0   :  { %6810 = vsyncpa [#allocation3 + $0x1], 1 }
 0x8c1   :  { %6811 = vsyncpa [#allocation6], 1 }
 0x8c2   :  { %6812 = vsyncpa [#allocation9], 1 }
 0x8c3   :  { %6813 = vsyncpa [#allocation4], 1 }
 0x8c4   :  { %6815 = vsyncpa [#allocation4 + $0x1], 1 }

</bundles_post_ra>
